<compile_context>
chip_gen: v7x
topology: tpu7x:2x2x1
jax: 0.10.0
libtpu: 0.0.40
codegen_flags: <defaults>
</compile_context>

<pallas_src>
import functools

import jax
import jax.numpy as jnp
from jax.experimental import pallas as pl
from jax.experimental.pallas import tpu as pltpu


# ---------------------------------------------------------------------------
# Kernels
# ---------------------------------------------------------------------------

def _gate_math(gi_t, gh, h_prev, b_hn, H):
    """f32 GRU gate math. gi_t/gh: (Bp, 3H), h_prev/b_hn: (Bp, H)."""
    # Fused r,z: one sigmoid over a (Bp, 2H) slab (single EUP stream).
    rz = jax.nn.sigmoid(gi_t[:, :2 * H] + gh[:, :2 * H])
    r = rz[:, :H]
    z = rz[:, H:]
    # n-gate: PyTorch semantics -- b_hh(n) stays inside r * (...).
    n = jnp.tanh(gi_t[:, 2 * H:] + r * (gh[:, 2 * H:] + b_hn))
    # h_new = (1-z)*n + z*h_prev, rewritten with one fewer VPU op.
    return n + z * (h_prev - n)


def _latent_prior_kernel_unrolled(x_ref, wih_ref, whh_ref, bgi_ref, bhn_ref,
                                  wfc_ref, bfc_ref, out_ref, hs_ref,
                                  *, seq_len, batch_pad, hidden_size):
    """Small-T path: fully unrolled loop, gi kept as a value (static slices).

    x_ref  : (T*Bp, D)  bf16, time-major rows (row = t * Bp + b)
    hs_ref : (T*Bp, H)  f32 scratch -- hidden states for the deferred fc GEMM
    out_ref: (T*Bp, Dp) f32, lane-dense (Dp = 128-padded latent_dim)
    """
    T, Bp, H = seq_len, batch_pad, hidden_size

    # Prologue: hoisted input projection for all timesteps (one bf16 GEMM).
    gi = (jnp.dot(x_ref[...], wih_ref[...], preferred_element_type=jnp.float32)
          + bgi_ref[...])
    # Hoist the n-gate bias broadcast out of the loop (no per-iter broadcast).
    b_hn = jnp.broadcast_to(bhn_ref[...], (Bp, H))

    h = jnp.zeros((Bp, H), jnp.float32)
    h_b = jnp.zeros((Bp, H), jnp.bfloat16)
    for t in range(T):                                  # fully unrolled
        gi_t = gi[t * Bp:(t + 1) * Bp, :]               # static vreg slice
        gh = jnp.dot(h_b, whh_ref[...], preferred_element_type=jnp.float32)
        h = _gate_math(gi_t, gh, h, b_hn, H)
        h_b = h.astype(jnp.bfloat16)                    # bf16 only at dot boundary
        hs_ref[t * Bp:(t + 1) * Bp, :] = h

    # Epilogue: deferred Linear head, one lane-dense bf16 GEMM, full-lane stores.
    out_ref[...] = (
        jnp.dot(hs_ref[...].astype(jnp.bfloat16), wfc_ref[...],
                preferred_element_type=jnp.float32)
        + bfc_ref[...]
    ).astype(out_ref.dtype)


def _latent_prior_kernel_scan(x_ref, wih_ref, whh_ref, bgi_ref, bhn_ref,
                              wfc_ref, bfc_ref, out_ref, gi_ref, hs_ref,
                              *, seq_len, batch_pad, hidden_size, unroll):
    """Large-T path: bounded-unroll fori_loop with a gi VMEM scratch."""
    T, Bp, H = seq_len, batch_pad, hidden_size

    gi_ref[...] = (
        jnp.dot(x_ref[...], wih_ref[...], preferred_element_type=jnp.float32)
        + bgi_ref[...])
    b_hn = jnp.broadcast_to(bhn_ref[...], (Bp, H))

    def step(t, carry):
        h, h_b = carry
        base = pl.multiple_of(t * Bp, Bp)
        gi_t = gi_ref[pl.ds(base, Bp), :]
        gh = jnp.dot(h_b, whh_ref[...], preferred_element_type=jnp.float32)
        h_new = _gate_math(gi_t, gh, h, b_hn, H)
        hs_ref[pl.ds(base, Bp), :] = h_new
        return h_new, h_new.astype(jnp.bfloat16)

    h0 = jnp.zeros((Bp, H), jnp.float32)
    jax.lax.fori_loop(0, T, step, (h0, h0.astype(jnp.bfloat16)), unroll=unroll)

    out_ref[...] = (
        jnp.dot(hs_ref[...].astype(jnp.bfloat16), wfc_ref[...],
                preferred_element_type=jnp.float32)
        + bfc_ref[...]
    ).astype(out_ref.dtype)


# ---------------------------------------------------------------------------
# Wrapper
# ---------------------------------------------------------------------------

def latent_prior_forward(z_seq, params):
    """z_seq: (B, T, latent_dim) float32 -> (B, T, latent_dim) float32."""
    B, T, D = z_seq.shape
    H = params["w_hh"].shape[0]
    assert params["w_ih"].shape == (D, 3 * H)
    assert params["w_hh"].shape == (H, 3 * H)
    assert params["w_fc"].shape == (H, D)
    assert H % 128 == 0, "gate lane-slices require H to be a multiple of 128"

    Bp = ((B + 7) // 8) * 8          # sublane-pad batch
    Dp = ((D + 127) // 128) * 128    # lane-dense output padding

    x = z_seq.astype(jnp.float32)
    if Bp != B:
        x = jnp.pad(x, ((0, Bp - B), (0, 0), (0, 0)))
    # Time-major, flattened to 2D; cast to bf16 only at the matmul boundary.
    x2d = jnp.transpose(x, (1, 0, 2)).reshape(T * Bp, D).astype(jnp.bfloat16)

    # Bias folding: b_ih (all gates) + b_hh (r,z) -> input projection;
    # n-gate b_hh stays inside r * (...) (PyTorch nn.GRU semantics).
    b_ih = params["b_ih"].reshape(1, 3 * H).astype(jnp.float32)
    b_hh = params["b_hh"].reshape(1, 3 * H).astype(jnp.float32)
    b_gi = b_ih.at[:, :2 * H].add(b_hh[:, :2 * H])
    b_hn = b_hh[:, 2 * H:]

    # Lane-dense fc head: zero-pad D -> Dp output lanes (unmasked vst).
    w_fc = jnp.zeros((H, Dp), jnp.float32).at[:, :D].set(
        params["w_fc"].astype(jnp.float32)).astype(jnp.bfloat16)
    b_fc = jnp.zeros((1, Dp), jnp.float32).at[:, :D].set(
        params["b_fc"].reshape(1, D).astype(jnp.float32))

    w_ih = params["w_ih"].astype(jnp.bfloat16)
    w_hh = params["w_hh"].astype(jnp.bfloat16)

    small = T <= 16
    if small:
        kernel = functools.partial(_latent_prior_kernel_unrolled,
                                   seq_len=T, batch_pad=Bp, hidden_size=H)
        scratch = [pltpu.VMEM((T * Bp, H), jnp.float32)]             # hs
    else:
        kernel = functools.partial(_latent_prior_kernel_scan,
                                   seq_len=T, batch_pad=Bp, hidden_size=H,
                                   unroll=min(T, 8))
        scratch = [pltpu.VMEM((T * Bp, 3 * H), jnp.float32),         # gi
                   pltpu.VMEM((T * Bp, H), jnp.float32)]             # hs

    # VMEM budget from the actual shapes (gridless -> single-copy residents),
    # with 2x headroom, clamped to stay portable to v7x's 64 MiB VMEM.
    vmem_bytes = (
        T * Bp * D * 2                      # x2d (bf16)
        + D * 3 * H * 2 + H * 3 * H * 2     # w_ih, w_hh (bf16)
        + 3 * H * 4 + H * 4                 # b_gi, b_hn (f32)
        + H * Dp * 2 + Dp * 4               # w_fc (bf16), b_fc (f32)
        + T * Bp * Dp * 4                   # out (f32)
        + T * Bp * H * 4                    # hs scratch (f32)
        + (0 if small else T * Bp * 3 * H * 4)   # gi scratch (f32)
    )
    vmem_limit = int(min(max(2 * vmem_bytes, 4 * 1024 * 1024),
                         64 * 1024 * 1024))

    out2d = pl.pallas_call(
        kernel,
        out_shape=jax.ShapeDtypeStruct((T * Bp, Dp), jnp.float32),
        scratch_shapes=scratch,
        compiler_params=pltpu.CompilerParams(vmem_limit_bytes=vmem_limit),
    )(x2d, w_ih, w_hh, b_gi, b_hn, w_fc, b_fc)

    out = out2d.reshape(T, Bp, Dp)[:, :B, :D]
    return jnp.transpose(out, (1, 0, 2))     # back to (B, T, D)


# ---------------------------------------------------------------------------
# Parameters & reference
# ---------------------------------------------------------------------------

def init_params(key, latent_dim, hidden_size):
    """Deterministic synthetic parameters matching nn.GRU / nn.Linear shapes.

    PyTorch stores weight_ih_l0 as (3H, D) and weight_hh_l0 as (3H, H); we
    keep the transposed forms so the kernel does x @ W^T directly.
    """
    k = jax.random.split(key, 6)
    s = 1.0 / jnp.sqrt(hidden_size)
    return {
        "w_ih": jax.random.uniform(k[0], (latent_dim, 3 * hidden_size),
                                   jnp.float32, -s, s),
        "w_hh": jax.random.uniform(k[1], (hidden_size, 3 * hidden_size),
                                   jnp.float32, -s, s),
        "b_ih": jax.random.uniform(k[2], (1, 3 * hidden_size),
                                   jnp.float32, -s, s),
        "b_hh": jax.random.uniform(k[3], (1, 3 * hidden_size),
                                   jnp.float32, -s, s),
        "w_fc": jax.random.uniform(k[4], (hidden_size, latent_dim),
                                   jnp.float32, -s, s),
        "b_fc": jax.random.uniform(k[5], (1, latent_dim),
                                   jnp.float32, -s, s),
    }


def latent_prior_reference(z_seq, params, operand_dtype=jnp.float32):
    """Pure-JAX GRU+Linear reference.

    operand_dtype=jnp.float32   -> faithful f32 reference of the nn.Module.
    operand_dtype=jnp.bfloat16  -> mirrors the kernel's dot-boundary casts
                                   (structural check, dtype rounding matched).
    """
    B, T, D = z_seq.shape
    H = params["w_hh"].shape[0]
    c = lambda a: a.astype(operand_dtype)
    w_ih, w_hh, w_fc = c(params["w_ih"]), c(params["w_hh"]), c(params["w_fc"])
    b_ih = params["b_ih"].reshape(1, 3 * H).astype(jnp.float32)
    b_hh = params["b_hh"].reshape(1, 3 * H).astype(jnp.float32)
    b_fc = params["b_fc"].reshape(1, D).astype(jnp.float32)

    def step(h, x_t):
        gi = jnp.dot(c(x_t), w_ih, preferred_element_type=jnp.float32) + b_ih
        gh = jnp.dot(c(h), w_hh, preferred_element_type=jnp.float32) + b_hh
        r = jax.nn.sigmoid(gi[:, :H] + gh[:, :H])
        z = jax.nn.sigmoid(gi[:, H:2 * H] + gh[:, H:2 * H])
        n = jnp.tanh(gi[:, 2 * H:] + r * gh[:, 2 * H:])
        h_new = (1.0 - z) * n + z * h
        y = jnp.dot(c(h_new), w_fc, preferred_element_type=jnp.float32) + b_fc
        return h_new, y

    h0 = jnp.zeros((B, H), jnp.float32)
    _, ys = jax.lax.scan(step, h0,
                         jnp.transpose(z_seq.astype(jnp.float32), (1, 0, 2)))
    return jnp.transpose(ys, (1, 0, 2))


# ---------------------------------------------------------------------------
# Self-test
# ---------------------------------------------------------------------------

if __name__ == "__main__":
    latent_dim = 64
    hidden_size = 128

    key = jax.random.PRNGKey(0)
    k_param, k_x1, k_x2 = jax.random.split(key, 3)
    params = init_params(k_param, latent_dim, hidden_size)

    # ---- Test 1: primary shape (B=2, T=8) -> fully-unrolled kernel path. ----
    B, T = 2, 8
    z_seq = jax.random.normal(k_x1, (B, T, latent_dim), jnp.float32)
    out = jax.block_until_ready(latent_prior_forward(z_seq, params))
    assert out.shape == (B, T, latent_dim)

    ref_f32 = latent_prior_reference(z_seq, params, operand_dtype=jnp.float32)
    ref_b16 = latent_prior_reference(z_seq, params, operand_dtype=jnp.bfloat16)
    err_f32 = float(jnp.max(jnp.abs(out - ref_f32)))
    err_b16 = float(jnp.max(jnp.abs(out - ref_b16)))
    # Tolerance vs pure-f32 reference is sized for bf16 MXU operands
    # (~2^-8 relative rounding) compounded over T recurrent steps.
    assert jnp.allclose(out, ref_f32, atol=2.5e-2, rtol=2.5e-2), \
        f"mismatch vs f32 reference, max abs err {err_f32}"
    # Structural check vs a reference with identical dot-boundary casts.
    assert jnp.allclose(out, ref_b16, atol=5e-3, rtol=5e-3), \
        f"mismatch vs bf16-boundary reference, max abs err {err_b16}"

    # ---- Test 2: longer sequence (B=3, T=48) -> fori_loop kernel path. ----
    B2, T2 = 3, 48
    z_seq2 = jax.random.normal(k_x2, (B2, T2, latent_dim), jnp.float32)
    out2 = jax.block_until_ready(latent_prior_forward(z_seq2, params))
    assert out2.shape == (B2, T2, latent_dim)
    ref2_b16 = latent_prior_reference(z_seq2, params, operand_dtype=jnp.bfloat16)
    err2 = float(jnp.max(jnp.abs(out2 - ref2_b16)))
    assert jnp.allclose(out2, ref2_b16, atol=1e-2, rtol=1e-2), \
        f"long-seq mismatch vs bf16-boundary reference, max abs err {err2}"

    print("KERNEL_OK")
</pallas_src>

<mosaic_0001>
module attributes {stable_mosaic.version = 11 : i64} {
  func.func @_latent_prior_kernel_unrolled(%arg0: memref<64x64xbf16, #tpu.memory_space<vmem>>, %arg1: memref<64x384xbf16, #tpu.memory_space<vmem>>, %arg2: memref<128x384xbf16, #tpu.memory_space<vmem>>, %arg3: memref<1x384xf32, #tpu.memory_space<vmem>>, %arg4: memref<1x128xf32, #tpu.memory_space<vmem>>, %arg5: memref<128x128xbf16, #tpu.memory_space<vmem>>, %arg6: memref<1x128xf32, #tpu.memory_space<vmem>>, %arg7: memref<64x128xf32, #tpu.memory_space<vmem>>, %arg8: memref<64x128xf32, #tpu.memory_space<vmem>>) attributes {dimension_semantics = [], scalar_prefetch = 0 : i64, scratch_operands = 1 : i64, tpu.core_type = #tpu.core_type<tc>} {
    %c0 = arith.constant 0 : index
    %c0_0 = arith.constant 0 : index
    %0 = vector.load %arg0[%c0, %c0_0] : memref<64x64xbf16, #tpu.memory_space<vmem>>, vector<64x64xbf16>
    %c0_1 = arith.constant 0 : index
    %c0_2 = arith.constant 0 : index
    %1 = vector.load %arg1[%c0_1, %c0_2] : memref<64x384xbf16, #tpu.memory_space<vmem>>, vector<64x384xbf16>
    %cst = arith.constant dense<0.000000e+00> : vector<64x384xf32>
    %2 = tpu.matmul %0, %1, %cst {dimension_numbers = #tpu.dot_dimension_numbers<[1], [0], [0], [1], [0, 0, 1, 1], [], []>} : vector<64x64xbf16>, vector<64x384xbf16>, vector<64x384xf32> -> vector<64x384xf32>
    %c0_3 = arith.constant 0 : index
    %c0_4 = arith.constant 0 : index
    %3 = vector.load %arg3[%c0_3, %c0_4] : memref<1x384xf32, #tpu.memory_space<vmem>>, vector<1x384xf32>
    %4 = vector.broadcast %3 : vector<1x384xf32> to vector<64x384xf32>
    %5 = arith.addf %2, %4 : vector<64x384xf32>
    %c0_5 = arith.constant 0 : index
    %c0_6 = arith.constant 0 : index
    %6 = vector.load %arg4[%c0_5, %c0_6] : memref<1x128xf32, #tpu.memory_space<vmem>>, vector<1x128xf32>
    %7 = vector.shape_cast %6 : vector<1x128xf32> to vector<1x128xf32>
    %8 = vector.broadcast %7 : vector<1x128xf32> to vector<8x128xf32>
    %cst_7 = arith.constant 0.000000e+00 : f32
    %9 = vector.broadcast %cst_7 : f32 to vector<8x128xf32>
    %cst_8 = arith.constant 0.000000e+00 : bf16
    %10 = vector.broadcast %cst_8 : bf16 to vector<8x128xbf16>
    %11 = vector.extract_strided_slice %5 {offsets = [0, 0], sizes = [8, 384], strides = [1, 1]} : vector<64x384xf32> to vector<8x384xf32>
    %c0_9 = arith.constant 0 : index
    %c0_10 = arith.constant 0 : index
    %12 = vector.load %arg2[%c0_9, %c0_10] : memref<128x384xbf16, #tpu.memory_space<vmem>>, vector<128x384xbf16>
    %cst_11 = arith.constant dense<0.000000e+00> : vector<8x384xf32>
    %13 = tpu.matmul %10, %12, %cst_11 {dimension_numbers = #tpu.dot_dimension_numbers<[1], [0], [0], [1], [0, 0, 1, 1], [], []>} : vector<8x128xbf16>, vector<128x384xbf16>, vector<8x384xf32> -> vector<8x384xf32>
    %14 = vector.extract_strided_slice %11 {offsets = [0, 0], sizes = [8, 256], strides = [1, 1]} : vector<8x384xf32> to vector<8x256xf32>
    %15 = vector.extract_strided_slice %13 {offsets = [0, 0], sizes = [8, 256], strides = [1, 1]} : vector<8x384xf32> to vector<8x256xf32>
    %16 = arith.addf %14, %15 : vector<8x256xf32>
    %17 = arith.negf %16 : vector<8x256xf32>
    %18 = math.exp %17 : vector<8x256xf32>
    %cst_12 = arith.constant 1.000000e+00 : f32
    %19 = vector.broadcast %cst_12 : f32 to vector<8x256xf32>
    %20 = arith.addf %19, %18 : vector<8x256xf32>
    %21 = arith.divf %19, %20 : vector<8x256xf32>
    %22 = vector.extract_strided_slice %21 {offsets = [0, 0], sizes = [8, 128], strides = [1, 1]} : vector<8x256xf32> to vector<8x128xf32>
    %23 = vector.extract_strided_slice %21 {offsets = [0, 128], sizes = [8, 128], strides = [1, 1]} : vector<8x256xf32> to vector<8x128xf32>
    %24 = vector.extract_strided_slice %11 {offsets = [0, 256], sizes = [8, 128], strides = [1, 1]} : vector<8x384xf32> to vector<8x128xf32>
    %25 = vector.extract_strided_slice %13 {offsets = [0, 256], sizes = [8, 128], strides = [1, 1]} : vector<8x384xf32> to vector<8x128xf32>
    %26 = arith.addf %25, %8 : vector<8x128xf32>
    %27 = arith.mulf %22, %26 : vector<8x128xf32>
    %28 = arith.addf %24, %27 : vector<8x128xf32>
    %29 = math.tanh %28 : vector<8x128xf32>
    %30 = arith.subf %9, %29 : vector<8x128xf32>
    %31 = arith.mulf %23, %30 : vector<8x128xf32>
    %32 = arith.addf %29, %31 : vector<8x128xf32>
    %33 = arith.truncf %32 : vector<8x128xf32> to vector<8x128xbf16>
    %c0_13 = arith.constant 0 : index
    %c0_14 = arith.constant 0 : index
    %34 = vector.load %arg8[%c0_13, %c0_14] : memref<64x128xf32, #tpu.memory_space<vmem>>, vector<8x128xf32>
    tpu.vector_store %arg8[%c0_13, %c0_14], %32 {strides = array<i32>} : memref<64x128xf32, #tpu.memory_space<vmem>>, vector<8x128xf32>,
    %35 = vector.extract_strided_slice %5 {offsets = [8, 0], sizes = [8, 384], strides = [1, 1]} : vector<64x384xf32> to vector<8x384xf32>
    %c0_15 = arith.constant 0 : index
    %c0_16 = arith.constant 0 : index
    %36 = vector.load %arg2[%c0_15, %c0_16] : memref<128x384xbf16, #tpu.memory_space<vmem>>, vector<128x384xbf16>
    %cst_17 = arith.constant dense<0.000000e+00> : vector<8x384xf32>
    %37 = tpu.matmul %33, %36, %cst_17 {dimension_numbers = #tpu.dot_dimension_numbers<[1], [0], [0], [1], [0, 0, 1, 1], [], []>} : vector<8x128xbf16>, vector<128x384xbf16>, vector<8x384xf32> -> vector<8x384xf32>
    %38 = vector.extract_strided_slice %35 {offsets = [0, 0], sizes = [8, 256], strides = [1, 1]} : vector<8x384xf32> to vector<8x256xf32>
    %39 = vector.extract_strided_slice %37 {offsets = [0, 0], sizes = [8, 256], strides = [1, 1]} : vector<8x384xf32> to vector<8x256xf32>
    %40 = arith.addf %38, %39 : vector<8x256xf32>
    %41 = arith.negf %40 : vector<8x256xf32>
    %42 = math.exp %41 : vector<8x256xf32>
    %cst_18 = arith.constant 1.000000e+00 : f32
    %43 = vector.broadcast %cst_18 : f32 to vector<8x256xf32>
    %44 = arith.addf %43, %42 : vector<8x256xf32>
    %45 = arith.divf %43, %44 : vector<8x256xf32>
    %46 = vector.extract_strided_slice %45 {offsets = [0, 0], sizes = [8, 128], strides = [1, 1]} : vector<8x256xf32> to vector<8x128xf32>
    %47 = vector.extract_strided_slice %45 {offsets = [0, 128], sizes = [8, 128], strides = [1, 1]} : vector<8x256xf32> to vector<8x128xf32>
    %48 = vector.extract_strided_slice %35 {offsets = [0, 256], sizes = [8, 128], strides = [1, 1]} : vector<8x384xf32> to vector<8x128xf32>
    %49 = vector.extract_strided_slice %37 {offsets = [0, 256], sizes = [8, 128], strides = [1, 1]} : vector<8x384xf32> to vector<8x128xf32>
    %50 = arith.addf %49, %8 : vector<8x128xf32>
    %51 = arith.mulf %46, %50 : vector<8x128xf32>
    %52 = arith.addf %48, %51 : vector<8x128xf32>
    %53 = math.tanh %52 : vector<8x128xf32>
    %54 = arith.subf %32, %53 : vector<8x128xf32>
    %55 = arith.mulf %47, %54 : vector<8x128xf32>
    %56 = arith.addf %53, %55 : vector<8x128xf32>
    %57 = arith.truncf %56 : vector<8x128xf32> to vector<8x128xbf16>
    %c8 = arith.constant 8 : index
    %c0_19 = arith.constant 0 : index
    %58 = vector.load %arg8[%c8, %c0_19] : memref<64x128xf32, #tpu.memory_space<vmem>>, vector<8x128xf32>
    tpu.vector_store %arg8[%c8, %c0_19], %56 {strides = array<i32>} : memref<64x128xf32, #tpu.memory_space<vmem>>, vector<8x128xf32>,
    %59 = vector.extract_strided_slice %5 {offsets = [16, 0], sizes = [8, 384], strides = [1, 1]} : vector<64x384xf32> to vector<8x384xf32>
    %c0_20 = arith.constant 0 : index
    %c0_21 = arith.constant 0 : index
    %60 = vector.load %arg2[%c0_20, %c0_21] : memref<128x384xbf16, #tpu.memory_space<vmem>>, vector<128x384xbf16>
    %cst_22 = arith.constant dense<0.000000e+00> : vector<8x384xf32>
    %61 = tpu.matmul %57, %60, %cst_22 {dimension_numbers = #tpu.dot_dimension_numbers<[1], [0], [0], [1], [0, 0, 1, 1], [], []>} : vector<8x128xbf16>, vector<128x384xbf16>, vector<8x384xf32> -> vector<8x384xf32>
    %62 = vector.extract_strided_slice %59 {offsets = [0, 0], sizes = [8, 256], strides = [1, 1]} : vector<8x384xf32> to vector<8x256xf32>
    %63 = vector.extract_strided_slice %61 {offsets = [0, 0], sizes = [8, 256], strides = [1, 1]} : vector<8x384xf32> to vector<8x256xf32>
    %64 = arith.addf %62, %63 : vector<8x256xf32>
    %65 = arith.negf %64 : vector<8x256xf32>
    %66 = math.exp %65 : vector<8x256xf32>
    %cst_23 = arith.constant 1.000000e+00 : f32
    %67 = vector.broadcast %cst_23 : f32 to vector<8x256xf32>
    %68 = arith.addf %67, %66 : vector<8x256xf32>
    %69 = arith.divf %67, %68 : vector<8x256xf32>
    %70 = vector.extract_strided_slice %69 {offsets = [0, 0], sizes = [8, 128], strides = [1, 1]} : vector<8x256xf32> to vector<8x128xf32>
    %71 = vector.extract_strided_slice %69 {offsets = [0, 128], sizes = [8, 128], strides = [1, 1]} : vector<8x256xf32> to vector<8x128xf32>
    %72 = vector.extract_strided_slice %59 {offsets = [0, 256], sizes = [8, 128], strides = [1, 1]} : vector<8x384xf32> to vector<8x128xf32>
    %73 = vector.extract_strided_slice %61 {offsets = [0, 256], sizes = [8, 128], strides = [1, 1]} : vector<8x384xf32> to vector<8x128xf32>
    %74 = arith.addf %73, %8 : vector<8x128xf32>
    %75 = arith.mulf %70, %74 : vector<8x128xf32>
    %76 = arith.addf %72, %75 : vector<8x128xf32>
    %77 = math.tanh %76 : vector<8x128xf32>
    %78 = arith.subf %56, %77 : vector<8x128xf32>
    %79 = arith.mulf %71, %78 : vector<8x128xf32>
    %80 = arith.addf %77, %79 : vector<8x128xf32>
    %81 = arith.truncf %80 : vector<8x128xf32> to vector<8x128xbf16>
    %c16 = arith.constant 16 : index
    %c0_24 = arith.constant 0 : index
    %82 = vector.load %arg8[%c16, %c0_24] : memref<64x128xf32, #tpu.memory_space<vmem>>, vector<8x128xf32>
    tpu.vector_store %arg8[%c16, %c0_24], %80 {strides = array<i32>} : memref<64x128xf32, #tpu.memory_space<vmem>>, vector<8x128xf32>,
    %83 = vector.extract_strided_slice %5 {offsets = [24, 0], sizes = [8, 384], strides = [1, 1]} : vector<64x384xf32> to vector<8x384xf32>
    %c0_25 = arith.constant 0 : index
    %c0_26 = arith.constant 0 : index
    %84 = vector.load %arg2[%c0_25, %c0_26] : memref<128x384xbf16, #tpu.memory_space<vmem>>, vector<128x384xbf16>
    %cst_27 = arith.constant dense<0.000000e+00> : vector<8x384xf32>
    %85 = tpu.matmul %81, %84, %cst_27 {dimension_numbers = #tpu.dot_dimension_numbers<[1], [0], [0], [1], [0, 0, 1, 1], [], []>} : vector<8x128xbf16>, vector<128x384xbf16>, vector<8x384xf32> -> vector<8x384xf32>
    %86 = vector.extract_strided_slice %83 {offsets = [0, 0], sizes = [8, 256], strides = [1, 1]} : vector<8x384xf32> to vector<8x256xf32>
    %87 = vector.extract_strided_slice %85 {offsets = [0, 0], sizes = [8, 256], strides = [1, 1]} : vector<8x384xf32> to vector<8x256xf32>
    %88 = arith.addf %86, %87 : vector<8x256xf32>
    %89 = arith.negf %88 : vector<8x256xf32>
    %90 = math.exp %89 : vector<8x256xf32>
    %cst_28 = arith.constant 1.000000e+00 : f32
    %91 = vector.broadcast %cst_28 : f32 to vector<8x256xf32>
    %92 = arith.addf %91, %90 : vector<8x256xf32>
    %93 = arith.divf %91, %92 : vector<8x256xf32>
    %94 = vector.extract_strided_slice %93 {offsets = [0, 0], sizes = [8, 128], strides = [1, 1]} : vector<8x256xf32> to vector<8x128xf32>
    %95 = vector.extract_strided_slice %93 {offsets = [0, 128], sizes = [8, 128], strides = [1, 1]} : vector<8x256xf32> to vector<8x128xf32>
    %96 = vector.extract_strided_slice %83 {offsets = [0, 256], sizes = [8, 128], strides = [1, 1]} : vector<8x384xf32> to vector<8x128xf32>
    %97 = vector.extract_strided_slice %85 {offsets = [0, 256], sizes = [8, 128], strides = [1, 1]} : vector<8x384xf32> to vector<8x128xf32>
    %98 = arith.addf %97, %8 : vector<8x128xf32>
    %99 = arith.mulf %94, %98 : vector<8x128xf32>
    %100 = arith.addf %96, %99 : vector<8x128xf32>
    %101 = math.tanh %100 : vector<8x128xf32>
    %102 = arith.subf %80, %101 : vector<8x128xf32>
    %103 = arith.mulf %95, %102 : vector<8x128xf32>
    %104 = arith.addf %101, %103 : vector<8x128xf32>
    %105 = arith.truncf %104 : vector<8x128xf32> to vector<8x128xbf16>
    %c24 = arith.constant 24 : index
    %c0_29 = arith.constant 0 : index
    %106 = vector.load %arg8[%c24, %c0_29] : memref<64x128xf32, #tpu.memory_space<vmem>>, vector<8x128xf32>
    tpu.vector_store %arg8[%c24, %c0_29], %104 {strides = array<i32>} : memref<64x128xf32, #tpu.memory_space<vmem>>, vector<8x128xf32>,
    %107 = vector.extract_strided_slice %5 {offsets = [32, 0], sizes = [8, 384], strides = [1, 1]} : vector<64x384xf32> to vector<8x384xf32>
    %c0_30 = arith.constant 0 : index
    %c0_31 = arith.constant 0 : index
    %108 = vector.load %arg2[%c0_30, %c0_31] : memref<128x384xbf16, #tpu.memory_space<vmem>>, vector<128x384xbf16>
    %cst_32 = arith.constant dense<0.000000e+00> : vector<8x384xf32>
    %109 = tpu.matmul %105, %108, %cst_32 {dimension_numbers = #tpu.dot_dimension_numbers<[1], [0], [0], [1], [0, 0, 1, 1], [], []>} : vector<8x128xbf16>, vector<128x384xbf16>, vector<8x384xf32> -> vector<8x384xf32>
    %110 = vector.extract_strided_slice %107 {offsets = [0, 0], sizes = [8, 256], strides = [1, 1]} : vector<8x384xf32> to vector<8x256xf32>
    %111 = vector.extract_strided_slice %109 {offsets = [0, 0], sizes = [8, 256], strides = [1, 1]} : vector<8x384xf32> to vector<8x256xf32>
    %112 = arith.addf %110, %111 : vector<8x256xf32>
    %113 = arith.negf %112 : vector<8x256xf32>
    %114 = math.exp %113 : vector<8x256xf32>
    %cst_33 = arith.constant 1.000000e+00 : f32
    %115 = vector.broadcast %cst_33 : f32 to vector<8x256xf32>
    %116 = arith.addf %115, %114 : vector<8x256xf32>
    %117 = arith.divf %115, %116 : vector<8x256xf32>
    %118 = vector.extract_strided_slice %117 {offsets = [0, 0], sizes = [8, 128], strides = [1, 1]} : vector<8x256xf32> to vector<8x128xf32>
    %119 = vector.extract_strided_slice %117 {offsets = [0, 128], sizes = [8, 128], strides = [1, 1]} : vector<8x256xf32> to vector<8x128xf32>
    %120 = vector.extract_strided_slice %107 {offsets = [0, 256], sizes = [8, 128], strides = [1, 1]} : vector<8x384xf32> to vector<8x128xf32>
    %121 = vector.extract_strided_slice %109 {offsets = [0, 256], sizes = [8, 128], strides = [1, 1]} : vector<8x384xf32> to vector<8x128xf32>
    %122 = arith.addf %121, %8 : vector<8x128xf32>
    %123 = arith.mulf %118, %122 : vector<8x128xf32>
    %124 = arith.addf %120, %123 : vector<8x128xf32>
    %125 = math.tanh %124 : vector<8x128xf32>
    %126 = arith.subf %104, %125 : vector<8x128xf32>
    %127 = arith.mulf %119, %126 : vector<8x128xf32>
    %128 = arith.addf %125, %127 : vector<8x128xf32>
    %129 = arith.truncf %128 : vector<8x128xf32> to vector<8x128xbf16>
    %c32 = arith.constant 32 : index
    %c0_34 = arith.constant 0 : index
    %130 = vector.load %arg8[%c32, %c0_34] : memref<64x128xf32, #tpu.memory_space<vmem>>, vector<8x128xf32>
    tpu.vector_store %arg8[%c32, %c0_34], %128 {strides = array<i32>} : memref<64x128xf32, #tpu.memory_space<vmem>>, vector<8x128xf32>,
    %131 = vector.extract_strided_slice %5 {offsets = [40, 0], sizes = [8, 384], strides = [1, 1]} : vector<64x384xf32> to vector<8x384xf32>
    %c0_35 = arith.constant 0 : index
    %c0_36 = arith.constant 0 : index
    %132 = vector.load %arg2[%c0_35, %c0_36] : memref<128x384xbf16, #tpu.memory_space<vmem>>, vector<128x384xbf16>
    %cst_37 = arith.constant dense<0.000000e+00> : vector<8x384xf32>
    %133 = tpu.matmul %129, %132, %cst_37 {dimension_numbers = #tpu.dot_dimension_numbers<[1], [0], [0], [1], [0, 0, 1, 1], [], []>} : vector<8x128xbf16>, vector<128x384xbf16>, vector<8x384xf32> -> vector<8x384xf32>
    %134 = vector.extract_strided_slice %131 {offsets = [0, 0], sizes = [8, 256], strides = [1, 1]} : vector<8x384xf32> to vector<8x256xf32>
    %135 = vector.extract_strided_slice %133 {offsets = [0, 0], sizes = [8, 256], strides = [1, 1]} : vector<8x384xf32> to vector<8x256xf32>
    %136 = arith.addf %134, %135 : vector<8x256xf32>
    %137 = arith.negf %136 : vector<8x256xf32>
    %138 = math.exp %137 : vector<8x256xf32>
    %cst_38 = arith.constant 1.000000e+00 : f32
    %139 = vector.broadcast %cst_38 : f32 to vector<8x256xf32>
    %140 = arith.addf %139, %138 : vector<8x256xf32>
    %141 = arith.divf %139, %140 : vector<8x256xf32>
    %142 = vector.extract_strided_slice %141 {offsets = [0, 0], sizes = [8, 128], strides = [1, 1]} : vector<8x256xf32> to vector<8x128xf32>
    %143 = vector.extract_strided_slice %141 {offsets = [0, 128], sizes = [8, 128], strides = [1, 1]} : vector<8x256xf32> to vector<8x128xf32>
    %144 = vector.extract_strided_slice %131 {offsets = [0, 256], sizes = [8, 128], strides = [1, 1]} : vector<8x384xf32> to vector<8x128xf32>
    %145 = vector.extract_strided_slice %133 {offsets = [0, 256], sizes = [8, 128], strides = [1, 1]} : vector<8x384xf32> to vector<8x128xf32>
    %146 = arith.addf %145, %8 : vector<8x128xf32>
    %147 = arith.mulf %142, %146 : vector<8x128xf32>
    %148 = arith.addf %144, %147 : vector<8x128xf32>
    %149 = math.tanh %148 : vector<8x128xf32>
    %150 = arith.subf %128, %149 : vector<8x128xf32>
    %151 = arith.mulf %143, %150 : vector<8x128xf32>
    %152 = arith.addf %149, %151 : vector<8x128xf32>
    %153 = arith.truncf %152 : vector<8x128xf32> to vector<8x128xbf16>
    %c40 = arith.constant 40 : index
    %c0_39 = arith.constant 0 : index
    %154 = vector.load %arg8[%c40, %c0_39] : memref<64x128xf32, #tpu.memory_space<vmem>>, vector<8x128xf32>
    tpu.vector_store %arg8[%c40, %c0_39], %152 {strides = array<i32>} : memref<64x128xf32, #tpu.memory_space<vmem>>, vector<8x128xf32>,
    %155 = vector.extract_strided_slice %5 {offsets = [48, 0], sizes = [8, 384], strides = [1, 1]} : vector<64x384xf32> to vector<8x384xf32>
    %c0_40 = arith.constant 0 : index
    %c0_41 = arith.constant 0 : index
    %156 = vector.load %arg2[%c0_40, %c0_41] : memref<128x384xbf16, #tpu.memory_space<vmem>>, vector<128x384xbf16>
    %cst_42 = arith.constant dense<0.000000e+00> : vector<8x384xf32>
    %157 = tpu.matmul %153, %156, %cst_42 {dimension_numbers = #tpu.dot_dimension_numbers<[1], [0], [0], [1], [0, 0, 1, 1], [], []>} : vector<8x128xbf16>, vector<128x384xbf16>, vector<8x384xf32> -> vector<8x384xf32>
    %158 = vector.extract_strided_slice %155 {offsets = [0, 0], sizes = [8, 256], strides = [1, 1]} : vector<8x384xf32> to vector<8x256xf32>
    %159 = vector.extract_strided_slice %157 {offsets = [0, 0], sizes = [8, 256], strides = [1, 1]} : vector<8x384xf32> to vector<8x256xf32>
    %160 = arith.addf %158, %159 : vector<8x256xf32>
    %161 = arith.negf %160 : vector<8x256xf32>
    %162 = math.exp %161 : vector<8x256xf32>
    %cst_43 = arith.constant 1.000000e+00 : f32
    %163 = vector.broadcast %cst_43 : f32 to vector<8x256xf32>
    %164 = arith.addf %163, %162 : vector<8x256xf32>
    %165 = arith.divf %163, %164 : vector<8x256xf32>
    %166 = vector.extract_strided_slice %165 {offsets = [0, 0], sizes = [8, 128], strides = [1, 1]} : vector<8x256xf32> to vector<8x128xf32>
    %167 = vector.extract_strided_slice %165 {offsets = [0, 128], sizes = [8, 128], strides = [1, 1]} : vector<8x256xf32> to vector<8x128xf32>
    %168 = vector.extract_strided_slice %155 {offsets = [0, 256], sizes = [8, 128], strides = [1, 1]} : vector<8x384xf32> to vector<8x128xf32>
    %169 = vector.extract_strided_slice %157 {offsets = [0, 256], sizes = [8, 128], strides = [1, 1]} : vector<8x384xf32> to vector<8x128xf32>
    %170 = arith.addf %169, %8 : vector<8x128xf32>
    %171 = arith.mulf %166, %170 : vector<8x128xf32>
    %172 = arith.addf %168, %171 : vector<8x128xf32>
    %173 = math.tanh %172 : vector<8x128xf32>
    %174 = arith.subf %152, %173 : vector<8x128xf32>
    %175 = arith.mulf %167, %174 : vector<8x128xf32>
    %176 = arith.addf %173, %175 : vector<8x128xf32>
    %177 = arith.truncf %176 : vector<8x128xf32> to vector<8x128xbf16>
    %c48 = arith.constant 48 : index
    %c0_44 = arith.constant 0 : index
    %178 = vector.load %arg8[%c48, %c0_44] : memref<64x128xf32, #tpu.memory_space<vmem>>, vector<8x128xf32>
    tpu.vector_store %arg8[%c48, %c0_44], %176 {strides = array<i32>} : memref<64x128xf32, #tpu.memory_space<vmem>>, vector<8x128xf32>,
    %179 = vector.extract_strided_slice %5 {offsets = [56, 0], sizes = [8, 384], strides = [1, 1]} : vector<64x384xf32> to vector<8x384xf32>
    %c0_45 = arith.constant 0 : index
    %c0_46 = arith.constant 0 : index
    %180 = vector.load %arg2[%c0_45, %c0_46] : memref<128x384xbf16, #tpu.memory_space<vmem>>, vector<128x384xbf16>
    %cst_47 = arith.constant dense<0.000000e+00> : vector<8x384xf32>
    %181 = tpu.matmul %177, %180, %cst_47 {dimension_numbers = #tpu.dot_dimension_numbers<[1], [0], [0], [1], [0, 0, 1, 1], [], []>} : vector<8x128xbf16>, vector<128x384xbf16>, vector<8x384xf32> -> vector<8x384xf32>
    %182 = vector.extract_strided_slice %179 {offsets = [0, 0], sizes = [8, 256], strides = [1, 1]} : vector<8x384xf32> to vector<8x256xf32>
    %183 = vector.extract_strided_slice %181 {offsets = [0, 0], sizes = [8, 256], strides = [1, 1]} : vector<8x384xf32> to vector<8x256xf32>
    %184 = arith.addf %182, %183 : vector<8x256xf32>
    %185 = arith.negf %184 : vector<8x256xf32>
    %186 = math.exp %185 : vector<8x256xf32>
    %cst_48 = arith.constant 1.000000e+00 : f32
    %187 = vector.broadcast %cst_48 : f32 to vector<8x256xf32>
    %188 = arith.addf %187, %186 : vector<8x256xf32>
    %189 = arith.divf %187, %188 : vector<8x256xf32>
    %190 = vector.extract_strided_slice %189 {offsets = [0, 0], sizes = [8, 128], strides = [1, 1]} : vector<8x256xf32> to vector<8x128xf32>
    %191 = vector.extract_strided_slice %189 {offsets = [0, 128], sizes = [8, 128], strides = [1, 1]} : vector<8x256xf32> to vector<8x128xf32>
    %192 = vector.extract_strided_slice %179 {offsets = [0, 256], sizes = [8, 128], strides = [1, 1]} : vector<8x384xf32> to vector<8x128xf32>
    %193 = vector.extract_strided_slice %181 {offsets = [0, 256], sizes = [8, 128], strides = [1, 1]} : vector<8x384xf32> to vector<8x128xf32>
    %194 = arith.addf %193, %8 : vector<8x128xf32>
    %195 = arith.mulf %190, %194 : vector<8x128xf32>
    %196 = arith.addf %192, %195 : vector<8x128xf32>
    %197 = math.tanh %196 : vector<8x128xf32>
    %198 = arith.subf %176, %197 : vector<8x128xf32>
    %199 = arith.mulf %191, %198 : vector<8x128xf32>
    %200 = arith.addf %197, %199 : vector<8x128xf32>
    %c56 = arith.constant 56 : index
    %c0_49 = arith.constant 0 : index
    %201 = vector.load %arg8[%c56, %c0_49] : memref<64x128xf32, #tpu.memory_space<vmem>>, vector<8x128xf32>
    tpu.vector_store %arg8[%c56, %c0_49], %200 {strides = array<i32>} : memref<64x128xf32, #tpu.memory_space<vmem>>, vector<8x128xf32>,
    %c0_50 = arith.constant 0 : index
    %c0_51 = arith.constant 0 : index
    %202 = vector.load %arg8[%c0_50, %c0_51] : memref<64x128xf32, #tpu.memory_space<vmem>>, vector<64x128xf32>
    %203 = arith.truncf %202 : vector<64x128xf32> to vector<64x128xbf16>
    %c0_52 = arith.constant 0 : index
    %c0_53 = arith.constant 0 : index
    %204 = vector.load %arg5[%c0_52, %c0_53] : memref<128x128xbf16, #tpu.memory_space<vmem>>, vector<128x128xbf16>
    %cst_54 = arith.constant dense<0.000000e+00> : vector<64x128xf32>
    %205 = tpu.matmul %203, %204, %cst_54 {dimension_numbers = #tpu.dot_dimension_numbers<[1], [0], [0], [1], [0, 0, 1, 1], [], []>} : vector<64x128xbf16>, vector<128x128xbf16>, vector<64x128xf32> -> vector<64x128xf32>
    %c0_55 = arith.constant 0 : index
    %c0_56 = arith.constant 0 : index
    %206 = vector.load %arg6[%c0_55, %c0_56] : memref<1x128xf32, #tpu.memory_space<vmem>>, vector<1x128xf32>
    %207 = vector.broadcast %206 : vector<1x128xf32> to vector<64x128xf32>
    %208 = arith.addf %205, %207 : vector<64x128xf32>
    %c0_57 = arith.constant 0 : index
    %c0_58 = arith.constant 0 : index
    %209 = vector.load %arg7[%c0_57, %c0_58] : memref<64x128xf32, #tpu.memory_space<vmem>>, vector<64x128xf32>
    tpu.vector_store %arg7[%c0_57, %c0_58], %208 {strides = array<i32>} : memref<64x128xf32, #tpu.memory_space<vmem>>, vector<64x128xf32>,
    return
  }
}

</mosaic_0001>

<bundles_post_ra>
// kernel: tpu_custom_call.1
= control target key start
LH: loop header
LB: loop body
LE: loop exit
PB: predicated region body
PF: predicated region fallthrough
CT: control target
= control target key end

     0   :  { %12 = vsyncpa [#allocation4], 0  ;;  %s4092_s0 = inlined_call_operand.hbm [shape: bf16[64,64], index: 0, kind: input, shape index: {}]   ;;  %s4093_s1 = inlined_call_operand.hbm [shape: bf16[64,384], index: 1, kind: input, shape index: {}]   ;;  %s4094_s2 = inlined_call_operand.hbm [shape: bf16[128,384], index: 2, kind: input, shape index: {}]   ;;  %s4095_s3 = inlined_call_operand.vmem [shape: f32[1,384], index: 3, kind: input, shape index: {}]   ;;  %s4096_s4 = inlined_call_operand.vmem [shape: f32[1,128], index: 4, kind: input, shape index: {}]   ;;  %s4097_s5 = inlined_call_operand.hbm [shape: bf16[128,128], index: 5, kind: input, shape index: {}]   ;;  %s4098_s6 = inlined_call_operand.vmem [shape: f32[1,128], index: 6, kind: input, shape index: {}]   ;;  %s4099_s7 = inlined_call_operand.hbm [shape: f32[64,128], index: 7, kind: output, shape index: {}]  }
   0x1   :  { %13 = vsyncpa [#allocation7], 0 }
   0x2   :  { %14 = vsyncpa [#allocation10], 0 }
   0x3   :  { %15 = vsyncpa [#allocation5], 0  ;;  %s3539_s24 = smov [#allocation6]   ;;  %s3421_s28 = scalar_lea.hbm %s4093_s1, 1536 }
   0x4   :  { %s33_s25 = sshll.u32 %s3539_s24, 4  ;;  %p3422_p0 = scmp.ne.s32.totalorder %s4093_s1, %s3421_s28  ;;  %s34_s25 = int_to_ptr.vmem [resolvable:$true] %s33_s25 }
   0x5   :  { %p3425_p1 = scmp.lt.u32.totalorder %s3421_s28, %s4093_s1 }
   0x7   :  { %p3427_p2 = pnand %p3425_p1, %p3422_p0 }
   0x9   :  { %3430 = shalt.err (!%p3427_p2)
}
   0xa   :  { %s3431_s10 = scalar_lea.vmem %s34_s25, 1536  ;;  %p3436_p4 = scmp.lt.s32.totalorder %s34_s25, %s34_s25 }
   0xb   :  { %p3432_p3 = scmp.ne.s32.totalorder %s34_s25, %s3431_s10  ;;  %p3437_p5 = scmp.lt.s32.totalorder %s3431_s10, %s3431_s10 }
   0xd   :  { %p3438_p6 = por %p3437_p5, %p3436_p4 }
   0xf   :  { %p3439_p7 = pnand %p3438_p6, %p3432_p3 }
  0x11   :  { %3442 = shalt.err (!%p3439_p7)
}
  0x12   :  { %s3540_s11 = smov 192   ;;  %s3541_s12 = smov 12  }
  0x13   :  { %39 = dma.hbm_to_vmem [thread:$0]  %s4093_s1, 1536, %s34_s25, [#allocation7], %s3540_s11, %s3540_s11, %s3541_s12  }
  0x14   :  { %s3542_s15 = smov [#allocation3]   ;;  %s3443_s19 = scalar_lea.hbm %s4092_s0, 512 }
  0x15   :  { %s21_s16 = sshll.u32 %s3542_s15, 4  ;;  %p3444_p8 = scmp.ne.s32.totalorder %s4092_s0, %s3443_s19  ;;  %s22_s16 = int_to_ptr.vmem [resolvable:$true] %s21_s16 }
  0x16   :  { %p3447_p9 = scmp.lt.u32.totalorder %s3443_s19, %s4092_s0 }
  0x18   :  { %p3449_p10 = pnand %p3447_p9, %p3444_p8 }
  0x1a   :  { %3452 = shalt.err (!%p3449_p10)
}
  0x1b   :  { %s3453_s24 = scalar_lea.vmem %s22_s16, 512  ;;  %p3458_p12 = scmp.lt.s32.totalorder %s22_s16, %s22_s16 }
  0x1c   :  { %p3454_p11 = scmp.ne.s32.totalorder %s22_s16, %s3453_s24  ;;  %p3459_p13 = scmp.lt.s32.totalorder %s3453_s24, %s3453_s24 }
  0x1e   :  { %p3460_p0 = por %p3459_p13, %p3458_p12 }
  0x20   :  { %p3461_p1 = pnand %p3460_p0, %p3454_p11 }
  0x22   :  { %3464 = shalt.err (!%p3461_p1)
}
  0x23   :  { %s3543_s1 = smov 64   ;;  %s3544_s25 = smov 4  }
  0x24   :  { %27 = dma.hbm_to_vmem [thread:$0]  %s4092_s0, 512, %s22_s16, [#allocation4], %s3543_s1, %s3543_s1, %s3544_s25  }
  0x25   :  { %s3545_s28 = smov [#allocation8]   ;;  %s3546_s30 = smov [#allocation9]  }
  0x26   :  { %s45_s29 = sshll.u32 %s3545_s28, 4  ;;  %s61_s8 = sshll.u32 %s3546_s30, 4  ;;  %s46_s29 = int_to_ptr.vmem [resolvable:$true] %s45_s29  ;;  %s3623_s8 = int_to_ptr.vmem [resolvable:$true] %s61_s8 }
  0x27   :  { %s3465_s13 = scalar_lea.hbm %s4094_s2, 3072 }
  0x28   :  { %p3466_p2 = scmp.ne.s32.totalorder %s4094_s2, %s3465_s13  ;;  %p3469_p3 = scmp.lt.u32.totalorder %s3465_s13, %s4094_s2 }
  0x2a   :  { %p3471_p4 = pnand %p3469_p3, %p3466_p2 }
  0x2c   :  { %3474 = shalt.err (!%p3471_p4)
}
  0x2d   :  { %s3475_s0 = scalar_lea.vmem %s46_s29, 3072  ;;  %p3480_p6 = scmp.lt.s32.totalorder %s46_s29, %s46_s29 }
  0x2e   :  { %p3476_p5 = scmp.ne.s32.totalorder %s46_s29, %s3475_s0  ;;  %p3481_p7 = scmp.lt.s32.totalorder %s3475_s0, %s3475_s0 }
  0x30   :  { %p3482_p8 = por %p3481_p7, %p3480_p6 }
  0x32   :  { %p3483_p9 = pnand %p3482_p8, %p3476_p5 }
  0x34   :  { %3486 = shalt.err (!%p3483_p9)
}
  0x35   :  { %51 = dma.hbm_to_vmem [thread:$0]  %s4094_s2, 3072, %s46_s29, [#allocation7], %s3540_s11, %s3540_s11, %s3541_s12  }
  0x36   :  { %s3487_s22 = scalar_lea.hbm %s4097_s5, 1024 }
  0x37   :  { %p3488_p10 = scmp.ne.s32.totalorder %s4097_s5, %s3487_s22  ;;  %p3491_p11 = scmp.lt.u32.totalorder %s3487_s22, %s4097_s5 }
  0x39   :  { %p3493_p12 = pnand %p3491_p11, %p3488_p10 }
  0x3b   :  { %3496 = shalt.err (!%p3493_p12)
}
  0x3c   :  { %s3497_s28 = scalar_lea.vmem %s3623_s8, 1024  ;;  %p3502_p0 = scmp.lt.s32.totalorder %s3623_s8, %s3623_s8 }
  0x3d   :  { %p3498_p13 = scmp.ne.s32.totalorder %s3623_s8, %s3497_s28  ;;  %p3503_p1 = scmp.lt.s32.totalorder %s3497_s28, %s3497_s28 }
  0x3f   :  { %p3504_p2 = por %p3503_p1, %p3502_p0 }
  0x41   :  { %p3505_p3 = pnand %p3504_p2, %p3498_p13 }
  0x43   :  { %3508 = shalt.err (!%p3505_p3)
}
  0x44   :  { %67 = dma.hbm_to_vmem [thread:$0]  %s4097_s5, 1024, %s3623_s8, [#allocation10], %s3543_s1, %s3543_s1, %s3544_s25  }
  0x45   :  { %3531 = dma.done.wait [#allocation4], 512  }
  0x46   :  { %3532 = vsyncadd [#allocation4], 4294966784 }
  0x47   :  { %3533 = dma.done.wait [#allocation7], 4608  }
  0x48   :  { %3534 = vsyncadd [#allocation7], 4294962688 }
  0x49   :  { %3535 = dma.done.wait [#allocation10], 1024  }
  0x4a   :  { %3536 = vsyncadd [#allocation10], 4294966272  ;;  %v3547_v0 = vmov 0   ;;  %v3200_v1 = vld [vmem:[#allocation6 + $0x4] ss:$12 sps:$4 sm:$0xff]   ;;  %vm208_vm0 = vcmask 523264   ;;  %v109_v50 = vlaneseq }
  0x4b   :  { %253 = vmatprep.mubr.bf16.mxu1 %v3547_v0  ;;  %558 = vmatprep.mubr.bf16.mxu0 %v3547_v0  ;;  %v3662_v2 = vld [vmem:[#allocation8 + $0x4] ss:$12 sps:$4 sm:$0xff]   ;;  %v3204_v3 = vld [vmem:[#allocation6] ss:$12 sps:$4 sm:$0xff]   ;;  %v3206_v5 = vld [vmem:[#allocation6 + $0x1c] ss:$12 sps:$4 sm:$0xff]  }
  0x4c   :  { %221 = vmatprep.subr.bf16.mxu1 %v3200_v1  ;;  %v3664_v4 = vld [vmem:[#allocation8] ss:$12 sps:$4 sm:$0xff]   ;;  %526 = vmatprep.subr.bf16.mxu0 %v3662_v2  ;;  %v3668_v6 = vld [vmem:[#allocation8 + $0x1c] ss:$12 sps:$4 sm:$0xff]   ;;  %v3210_v7 = vld [vmem:[#allocation6 + $0x18] ss:$12 sps:$4 sm:$0xff]  }
  0x4d   :  { %222 = vmatpush1.bf16.msra.mxu1 %v3204_v3  ;;  %527 = vmatpush1.bf16.msra.mxu0 %v3664_v4  ;;  %v3670_v8 = vld [vmem:[#allocation8 + $0x18] ss:$12 sps:$4 sm:$0xff]   ;;  %v3212_v9 = vld [vmem:[#allocation6 + $0x34] ss:$12 sps:$4 sm:$0xff]   ;;  %v3216_v11 = vld [vmem:[#allocation6 + $0x30] ss:$12 sps:$4 sm:$0xff]  }
  0x4e   :  { %223 = vmatprep.subr.bf16.mxu1 %v3206_v5  ;;  %528 = vmatprep.subr.bf16.mxu0 %v3668_v6  ;;  %v3673_v10 = vld [vmem:[#allocation8 + $0x34] ss:$12 sps:$4 sm:$0xff]   ;;  %v3675_v12 = vld [vmem:[#allocation8 + $0x30] ss:$12 sps:$4 sm:$0xff]   ;;  %v3218_v13 = vld [vmem:[#allocation6 + $0x4c] ss:$12 sps:$4 sm:$0xff]  }
  0x4f   :  { %v3679_v14 = vld [vmem:[#allocation8 + $0x4c] ss:$12 sps:$4 sm:$0xff]   ;;  %v3222_v15 = vld [vmem:[#allocation6 + $0x48] ss:$12 sps:$4 sm:$0xff]   ;;  %v3685_v18 = vld [vmem:[#allocation8 + $0x64] ss:$12 sps:$4 sm:$0xff]  }
  0x50   :  { %v3682_v16 = vld [vmem:[#allocation8 + $0x48] ss:$12 sps:$4 sm:$0xff]   ;;  %v3224_v19 = vld [vmem:[#allocation3] sm:$0xff]   ;;  %v3702_v27 = vld [vmem:[#allocation8 + $0x90] ss:$12 sps:$4 sm:$0xff]   ;;  %v3548_v32 = vmov 0.0  }
  0x51   :  { %224 = vmatpush1.bf16.msra.mxu1 %v3210_v7  ;;  %529 = vmatpush1.bf16.msra.mxu0 %v3670_v8  ;;  %v3225_v17 = vld [vmem:[#allocation6 + $0x8] ss:$12 sps:$4 sm:$0xff]   ;;  %v3688_v20 = vld [vmem:[#allocation8 + $0x60] ss:$12 sps:$4 sm:$0xff]   ;;  %v3694_v23 = vld [vmem:[#allocation8 + $0x78] ss:$12 sps:$4 sm:$0xff]  }
  0x52   :  { %225 = vmatprep.subr.bf16.mxu1 %v3212_v9  ;;  %530 = vmatprep.subr.bf16.mxu0 %v3673_v10  ;;  %v3691_v21 = vld [vmem:[#allocation8 + $0x7c] ss:$12 sps:$4 sm:$0xff]   ;;  %v3233_v22 = vld [vmem:[#allocation6 + $0x20] ss:$12 sps:$4 sm:$0xff]   ;;  %v3241_v25 = vld [vmem:[#allocation6 + $0x38] ss:$12 sps:$4 sm:$0xff]  }
  0x53   :  { %v3697_v24 = vld [vmem:[#allocation8 + $0x94] ss:$12 sps:$4 sm:$0xff]   ;;  %v3232_v26 = vld [vmem:[#allocation3 + $0x8] sm:$0xff]   ;;  %v3243_v29 = vld [vmem:[#allocation6 + $0x50] ss:$12 sps:$4 sm:$0xff]   ;;  %vm3549_vm1 = vmmov 0  }
  0x54   :  { %v3705_v28 = vld [vmem:[#allocation8 + $0xac] ss:$12 sps:$4 sm:$0xff]   ;;  %v3709_v30 = vld [vmem:[#allocation8 + $0xa8] ss:$12 sps:$4 sm:$0xff]   ;;  %v3247_v37 = vld [vmem:[#allocation8 + $0x50] ss:$12 sps:$4 sm:$0xff]  }
  0x55   :  { %226 = vmatpush1.bf16.msra.mxu1 %v3216_v11  ;;  %531 = vmatpush1.bf16.msra.mxu0 %v3675_v12  ;;  %v3240_v31 = vld [vmem:[#allocation3 + $0x10] sm:$0xff]   ;;  %v3242_v33 = vld [vmem:[#allocation3 + $0x18] sm:$0xff]   ;;  %v3245_v35 = vld [vmem:[#allocation8 + $0x20] ss:$12 sps:$4 sm:$0xff]   ;;  %v110_v51 = vshrl.u32 %v109_v50, 7 }
  0x56   :  { %227 = vmatprep.subr.bf16.mxu1 %v3218_v13  ;;  %532 = vmatprep.subr.bf16.mxu0 %v3679_v14  ;;  %v3244_v34 = vld [vmem:[#allocation8 + $0x8] ss:$12 sps:$4 sm:$0xff]   ;;  %v3246_v36 = vld [vmem:[#allocation8 + $0x38] ss:$12 sps:$4 sm:$0xff]   ;;  %v3249_v39 = vld [vmem:[#allocation8 + $0x80] ss:$12 sps:$4 sm:$0xff]  }
  0x57   :  { %v3248_v38 = vld [vmem:[#allocation8 + $0x68] ss:$12 sps:$4 sm:$0xff]   ;;  %v3250_v40 = vld [vmem:[#allocation8 + $0x98] ss:$12 sps:$4 sm:$0xff]   ;;  %v3251_v41 = vld [vmem:[#allocation8 + $0xb0] ss:$12 sps:$4 sm:$0xff]  }
  0x58   :  { %v3252_v42 = vld [vmem:[#allocation8 + $0x8] ss:$12 sps:$4 sm:$0xff]   ;;  %v3253_v43 = vld [vmem:[#allocation8 + $0x20] ss:$12 sps:$4 sm:$0xff]   ;;  %v3254_v44 = vld [vmem:[#allocation8 + $0x38] ss:$12 sps:$4 sm:$0xff]  }
  0x59   :  { %228 = vmatpush1.bf16.msra.mxu1 %v3222_v15  ;;  %533 = vmatpush1.bf16.msra.mxu0 %v3682_v16  ;;  %v3255_v45 = vld [vmem:[#allocation8 + $0x50] ss:$12 sps:$4 sm:$0xff]   ;;  %v3256_v46 = vld [vmem:[#allocation8 + $0x68] ss:$12 sps:$4 sm:$0xff]   ;;  %v3257_v47 = vld [vmem:[#allocation8 + $0x80] ss:$12 sps:$4 sm:$0xff]  }
  0x5a   :  { %2986 = vmatprep.subr.bf16.mxu1 %v3225_v17  ;;  %534 = vmatprep.subr.bf16.mxu0 %v3685_v18  ;;  %v3258_v48 = vld [vmem:[#allocation8 + $0x98] ss:$12 sps:$4 sm:$0xff]   ;;  %v3259_v49 = vld [vmem:[#allocation8 + $0xb0] ss:$12 sps:$4 sm:$0xff]   ;;  %v111_v52 = vsub.s32 0, %v110_v51  ;;  %v115_v54 = vsub.s32 1, %v110_v51 }
  0x5b   :  { %v107_v53 = vld [vmem:[%s4095_s3] sm:$0x7] }
  0x5c   :  { %2668 = vmatmul.mubr.msk.bf16.vlgmr.msra.gmra.mrb[0].mxu1 %vm208_vm0, %v3224_v19  ;;  %v112_v56 = vrot.slane %v107_v53, %v111_v52  ;;  %v116_v58 = vrot.slane %v107_v53, %v115_v54 }
  0x5d   :  { %2987 = vmatpush3.bf16.msra.mxu1 %v3225_v17  ;;  %535 = vmatpush1.bf16.msra.mxu0 %v3688_v20 }
  0x5e   :  { %536 = vmatprep.subr.bf16.mxu0 %v3691_v21  ;;  %263 = vmatprep.mubr.bf16.mxu1 %v3547_v0 }
  0x5f   :  { %2988 = vmatprep.subr.bf16.mxu1 %v3233_v22 }
  0x61   :  { %537 = vmatpush1.bf16.msra.mxu0 %v3694_v23  ;;  %2989 = vmatpush3.bf16.msra.mxu1 %v3233_v22 }
  0x62   :  { %538 = vmatprep.subr.bf16.mxu0 %v3697_v24  ;;  %2990 = vmatprep.subr.bf16.mxu1 %v3241_v25 }
  0x64   :  { %2669 = vmatmul.mubr.msk.bf16.gmra.mrb[4].mxu1 %vm208_vm0, %v3232_v26 }
  0x65   :  { %539 = vmatpush1.bf16.msra.mxu0 %v3702_v27  ;;  %273 = vmatprep.mubr.bf16.mxu1 %v3547_v0 }
  0x66   :  { %540 = vmatprep.subr.bf16.mxu0 %v3705_v28  ;;  %2991 = vmatpush3.bf16.msra.mxu1 %v3241_v25 }
  0x67   :  { %2992 = vmatprep.subr.bf16.mxu1 %v3243_v29 }
  0x69   :  { %541 = vmatpush1.bf16.msra.mxu0 %v3709_v30 }
  0x6a   :  { %2993 = vmatpush3.bf16.msra.mxu1 %v3243_v29  ;;  %790 = vmatprep.subr.bf16.mxu0 %v3662_v2 }
  0x6b   :  { %3002 = vmatprep.subr.bf16.mxu1 %v3548_v32 }
  0x6c   :  { %2670 = vmatmul.mubr.msk.bf16.gmra.mrb[8].mxu1 %vm208_vm0, %v3240_v31  ;;  %559 = vmatmul.mubr.bf16.vlgmr.msra.gmra.mrb[0].mxu0 %v3547_v0 }
  0x6d   :  { %283 = vmatprep.mubr.bf16.mxu1 %v3547_v0  ;;  %791 = vmatpush1.bf16.msra.mxu0 %v3664_v4 }
  0x6e   :  { %792 = vmatprep.subr.bf16.mxu0 %v3668_v6  ;;  %822 = vmatprep.mubr.bf16.mxu0 %v3547_v0 }
  0x71   :  { %793 = vmatpush1.bf16.msra.mxu0 %v3670_v8 }
  0x72   :  { %794 = vmatprep.subr.bf16.mxu0 %v3673_v10 }
  0x74   :  { %2671 = vmatmul.mubr.msk.bf16.gmra.mrb[12].mxu1 %vm208_vm0, %v3242_v33 }
  0x75   :  { %2994 = vmatprep.mubr.msk.bf16.mxu1 %vm208_vm0, %v3224_v19  ;;  %795 = vmatpush1.bf16.msra.mxu0 %v3675_v12 }
  0x76   :  { %796 = vmatprep.subr.bf16.mxu0 %v3679_v14 }
  0x79   :  { %797 = vmatpush1.bf16.msra.mxu0 %v3682_v16 }
  0x7a   :  { %798 = vmatprep.subr.bf16.mxu0 %v3685_v18 }
  0x7c   :  { %2995 = vmatmul.mubr.msk.bf16.vlgmr.msra.gmra.mrb[16].mxu1 %vm208_vm0, %v3232_v26 }
  0x7d   :  { %3003 = vmatpush3.bf16.msra.mxu1 %v3244_v34  ;;  %2998 = vmatprep.mubr.msk.bf16.mxu1 %vm208_vm0, %v3240_v31 }
  0x7e   :  { %3004 = vmatprep.subr.bf16.mxu1 %v3548_v32  ;;  %799 = vmatpush1.bf16.msra.mxu0 %v3688_v20 }
  0x7f   :  { %800 = vmatprep.subr.bf16.mxu0 %v3691_v21 }
  0x81   :  { %3005 = vmatpush3.bf16.msra.mxu1 %v3245_v35 }
  0x82   :  { %3006 = vmatprep.subr.bf16.mxu1 %v3548_v32  ;;  %801 = vmatpush1.bf16.msra.mxu0 %v3694_v23 }
  0x83   :  { %802 = vmatprep.subr.bf16.mxu0 %v3697_v24 }
  0x84   :  { %2999 = vmatmul.mubr.msk.bf16.gmra.mrb[20].mxu1 %vm208_vm0, %v3242_v33 }
  0x85   :  { %3007 = vmatpush3.bf16.msra.mxu1 %v3246_v36  ;;  %3018 = vmatprep.mubr.msk.bf16.mxu1 %vm3549_vm1, %v3548_v32 }
  0x86   :  { %3008 = vmatprep.subr.bf16.mxu1 %v3548_v32  ;;  %803 = vmatpush1.bf16.msra.mxu0 %v3702_v27 }
  0x87   :  { %804 = vmatprep.subr.bf16.mxu0 %v3705_v28 }
  0x89   :  { %3009 = vmatpush3.bf16.msra.mxu1 %v3247_v37 }
  0x8a   :  { %3010 = vmatprep.subr.bf16.mxu1 %v3548_v32  ;;  %805 = vmatpush1.bf16.msra.mxu0 %v3709_v30 }
  0x8b   :  { %1054 = vmatprep.subr.bf16.mxu0 %v3662_v2 }
  0x8d   :  { %3011 = vmatpush3.bf16.msra.mxu1 %v3248_v38 }
  0x8e   :  { %3012 = vmatprep.subr.bf16.mxu1 %v3548_v32 }
  0x91   :  { %3013 = vmatpush3.bf16.msra.mxu1 %v3249_v39 }
  0x92   :  { %3014 = vmatprep.subr.bf16.mxu1 %v3548_v32 }
  0x95   :  { %3015 = vmatpush3.bf16.msra.mxu1 %v3250_v40 }
  0x96   :  { %3016 = vmatprep.subr.bf16.mxu1 %v3548_v32 }
  0x99   :  { %3017 = vmatpush3.bf16.msra.mxu1 %v3251_v41 }
  0x9a   :  { %3022 = vmatprep.subr.bf16.mxu1 %v3548_v32 }
  0x9c   :  { %3019 = vmatmul.mubr.bf16.vlgmr.msra.gmra.mrb[24].mxu1 %v3547_v0 }
  0x9d   :  { %3038 = vmatprep.mubr.msk.bf16.mxu1 %vm3549_vm1, %v3548_v32  ;;  %3023 = vmatpush3.bf16.msra.mxu1 %v3252_v42 }
  0x9e   :  { %3024 = vmatprep.subr.bf16.mxu1 %v3548_v32 }
  0xa1   :  { %3025 = vmatpush3.bf16.msra.mxu1 %v3253_v43 }
  0xa2   :  { %3026 = vmatprep.subr.bf16.mxu1 %v3548_v32 }
  0xa5   :  { %3027 = vmatpush3.bf16.msra.mxu1 %v3254_v44  ;;  %v119_v44 = vsub.s32 2, %v110_v51 }
  0xa6   :  { %3028 = vmatprep.subr.bf16.mxu1 %v3548_v32 }
  0xa7   :  { %v120_v50 = vrot.slane %v107_v53, %v119_v44 }
  0xa9   :  { %3029 = vmatpush3.bf16.msra.mxu1 %v3255_v45 }
  0xaa   :  { %3030 = vmatprep.subr.bf16.mxu1 %v3548_v32 }
  0xad   :  { %3031 = vmatpush3.bf16.msra.mxu1 %v3256_v46 }
  0xae   :  { %3032 = vmatprep.subr.bf16.mxu1 %v3548_v32 }
  0xb1   :  { %3033 = vmatpush3.bf16.msra.mxu1 %v3257_v47 }
  0xb2   :  { %3034 = vmatprep.subr.bf16.mxu1 %v3548_v32 }
  0xb5   :  { %3035 = vmatpush3.bf16.msra.mxu1 %v3258_v48 }
  0xb6   :  { %3036 = vmatprep.subr.bf16.mxu1 %v3548_v32 }
  0xb9   :  { %3037 = vmatpush3.bf16.msra.mxu1 %v3259_v49 }
  0xba   :  { %3042 = vmatprep.subr.bf16.mxu1 %v3548_v32 }
 0x12f   :  { %v255_v55 = vpop.f32.mrb[0].mxu1 }
 0x130   :  { %v257_v57 = vpop.f32.mrb[1].mxu1  ;;  %v256_v15 = vadd.f32 %v255_v55, %v112_v56 }
 0x131   :  { %v259_v59 = vpop.f32.mrb[2].mxu1  ;;  %v258_v17 = vadd.f32 %v257_v57, %v116_v58 }
 0x132   :  { %v3765_v60 = vadd.f32 %v259_v59, %v112_v56  ;;  %v261_v61 = vpop.f32.mrb[3].mxu1 }
 0x133   :  { %v3767_v62 = vadd.f32 %v261_v61, %v116_v58 }
 0x137   :  { %v265_v63 = vpop.f32.mrb[4].mxu1 }
 0x138   :  { %v3769_v1 = vadd.f32 %v265_v63, %v112_v56  ;;  %v267_v3 = vpop.f32.mrb[5].mxu1 }
 0x139   :  { %v3771_v5 = vadd.f32 %v267_v3, %v116_v58  ;;  %v269_v7 = vpop.f32.mrb[6].mxu1 }
 0x13a   :  { %v3773_v9 = vadd.f32 %v269_v7, %v112_v56  ;;  %v271_v11 = vpop.f32.mrb[7].mxu1 }
 0x13b   :  { %v3775_v13 = vadd.f32 %v271_v11, %v116_v58 }
 0x13f   :  { %v275_v19 = vpop.f32.mrb[8].mxu1  ;;  %v560_v22 = vpop.f32.mrb[0].mxu0 }
 0x140   :  { %v3777_v25 = vadd.f32 %v275_v19, %v112_v56  ;;  %v607_v26 = vadd.f32 %v560_v22, %v256_v15  ;;  %v277_v29 = vpop.f32.mrb[9].mxu1  ;;  %v562_v31 = vpop.f32.mrb[1].mxu0 }
 0x141   :  { %v3779_v33 = vadd.f32 %v277_v29, %v116_v58  ;;  %v608_v34 = vadd.f32 %v562_v31, %v258_v17  ;;  %v279_v35 = vpop.f32.mrb[10].mxu1  ;;  %v564_v36 = vpop.f32.mrb[2].mxu0  ;;  %v3810_v29 = vld [vmem:[%s4096_s4] ss:$0 sm:$0xff] }
 0x142   :  { %v3781_v37 = vadd.f32 %v279_v35, %v112_v56  ;;  %v281_v38 = vpop.f32.mrb[11].mxu1  ;;  %v565_v39 = vpop.f32.mrb[3].mxu0  ;;  %v2701_v59 = vmul.f32 -1.442695, %v607_v26 }
 0x143   :  { %v3783_v40 = vadd.f32 %v281_v38, %v116_v58  ;;  %v2702_v22 = vmul.f32 -1.442695, %v608_v34 }
 0x144   :  { %3340 = vpow2.f32 %v2701_v59 }
 0x145   :  { %3342 = vpow2.f32 %v2702_v22  ;;  %v3265_v22 = vld [vmem:[#allocation8 + $0x80] ss:$12 sps:$4 sm:$0xff]  }
 0x147   :  { %v285_v41 = vpop.f32.mrb[12].mxu1 }
 0x148   :  { %v3785_v42 = vadd.f32 %v285_v41, %v112_v56  ;;  %v287_v43 = vpop.f32.mrb[13].mxu1 }
 0x149   :  { %v3787_v45 = vadd.f32 %v287_v43, %v116_v58  ;;  %v289_v46 = vpop.f32.mrb[14].mxu1 }
 0x14a   :  { %v3789_v47 = vadd.f32 %v289_v46, %v112_v56  ;;  %v291_v48 = vpop.f32.mrb[15].mxu1 }
 0x14b   :  { %v3791_v49 = vadd.f32 %v291_v48, %v116_v58 }
 0x14e   :  { %v3341_v19 = vpop.eup %3340 }
 0x14f   :  { %v2996_v52 = vpop.f32.mrb[16].mxu1  ;;  %v615_v26 = vadd.f32 1.0, %v3341_v19  ;;  %v3343_v35 = vpop.eup %3342  ;;  %v3264_v19 = vld [vmem:[#allocation8 + $0x68] ss:$12 sps:$4 sm:$0xff]  }
 0x150   :  { %v3793_v54 = vadd.f32 %v2996_v52, %v120_v50  ;;  %v328_v55 = vpop.f32.mrb[17].mxu1  ;;  %v616_v48 = vadd.f32 1.0, %v3343_v35 }
 0x151   :  { %v2997_v57 = vpop.f32.mrb[18].mxu1  ;;  %3344 = vrcp.f32 %v615_v26  ;;  %v329_v43 = vadd.f32 %v328_v55, %v120_v50  ;;  %v3261_v55 = vld [vmem:[#allocation8 + $0x20] ss:$12 sps:$4 sm:$0xff]   ;;  %v3267_v26 = vld [vmem:[#allocation8 + $0xb0] ss:$12 sps:$4 sm:$0xff]  }
 0x152   :  { %v3795_v61 = vadd.f32 %v2997_v57, %v120_v50  ;;  %v331_v63 = vpop.f32.mrb[19].mxu1 }
 0x153   :  { %v3797_v3 = vadd.f32 %v331_v63, %v120_v50 }
 0x157   :  { %v3000_v51 = vpop.f32.mrb[20].mxu1 }
 0x158   :  { %v3799_v7 = vadd.f32 %v3000_v51, %v120_v50  ;;  %v344_v56 = vpop.f32.mrb[21].mxu1 }
 0x159   :  { %v3801_v11 = vadd.f32 %v344_v56, %v120_v50  ;;  %v3001_v58 = vpop.f32.mrb[22].mxu1 }
 0x15a   :  { %v3803_v53 = vadd.f32 %v3001_v58, %v120_v50  ;;  %v347_v15 = vpop.f32.mrb[23].mxu1  ;;  %v3262_v58 = vld [vmem:[#allocation8 + $0x38] ss:$12 sps:$4 sm:$0xff]  }
 0x15b   :  { %v3805_v17 = vadd.f32 %v347_v15, %v120_v50  ;;  %v3345_v39 = vpop.eup %3344  ;;  %v3260_v50 = vld [vmem:[#allocation8 + $0x8] ss:$12 sps:$4 sm:$0xff]   ;;  %v3263_v15 = vld [vmem:[#allocation8 + $0x50] ss:$12 sps:$4 sm:$0xff]  }
 0x16f   :  { %v601_v31 = vpop.f32.mrb[24].mxu1 }
 0x170   :  { %v621_v36 = vadd.f32 %v3810_v29, %v601_v31  ;;  %v3020_v38 = vpop.f32.mrb[25].mxu1 }
 0x171   :  { %v604_v41 = vpop.f32.mrb[26].mxu1 }
 0x172   :  { %v622_v44 = vmul.f32 %v3345_v39, %v621_v36  ;;  %v3021_v46 = vpop.f32.mrb[27].mxu1 }
 0x174   :  { %v623_v34 = vadd.f32 %v622_v44, %v329_v43 }
 0x176   :  { %3346 = vtanh.f32 %v623_v34 }
 0x177   :  { %3348 = vrcp.f32 %v616_v48 }
 0x180   :  { %v3347_v52 = vpop.eup %3346 }
 0x181   :  { %v625_v57 = vsub.f32 0.0, %v3347_v52  ;;  %v3349_v59 = vpop.eup %3348 }
 0x183   :  { %v626_v63 = vmul.f32 %v3349_v59, %v625_v57 }
 0x185   :  { %v3813_v51 = vadd.f32 %v3347_v52, %v626_v63 }
 0x187   :  { %v628_v56 = vpack.c.bf16 %v3813_v51, %v3813_v51 }
 0x189   :  { %823 = vmatmul.mubr.bf16.vlgmr.msra.gmra.mrb[4].mxu0 %v628_v56  ;;  %3039 = vmatmul.mubr.bf16.vlgmr.msra.gmra.mrb[28].mxu1 %v628_v56 }
 0x18a   :  { %1055 = vmatpush1.bf16.msra.mxu0 %v3664_v4  ;;  %1086 = vmatprep.mubr.bf16.mxu0 %v3547_v0 }
 0x18b   :  { %1056 = vmatprep.subr.bf16.mxu0 %v3668_v6  ;;  %3058 = vmatprep.mubr.msk.bf16.mxu1 %vm3549_vm1, %v3548_v32 }
 0x18c   :  { %3043 = vmatpush3.bf16.msra.mxu1 %v3260_v50 }
 0x18d   :  { %3044 = vmatprep.subr.bf16.mxu1 %v3548_v32 }
 0x18e   :  { %1057 = vmatpush1.bf16.msra.mxu0 %v3670_v8 }
 0x18f   :  { %1058 = vmatprep.subr.bf16.mxu0 %v3673_v10 }
 0x190   :  { %3045 = vmatpush3.bf16.msra.mxu1 %v3261_v55 }
 0x191   :  { %3046 = vmatprep.subr.bf16.mxu1 %v3548_v32 }
 0x192   :  { %1059 = vmatpush1.bf16.msra.mxu0 %v3675_v12 }
 0x193   :  { %1060 = vmatprep.subr.bf16.mxu0 %v3679_v14 }
 0x194   :  { %3047 = vmatpush3.bf16.msra.mxu1 %v3262_v58 }
 0x195   :  { %3048 = vmatprep.subr.bf16.mxu1 %v3548_v32 }
 0x196   :  { %1061 = vmatpush1.bf16.msra.mxu0 %v3682_v16 }
 0x197   :  { %1062 = vmatprep.subr.bf16.mxu0 %v3685_v18 }
 0x198   :  { %3049 = vmatpush3.bf16.msra.mxu1 %v3263_v15 }
 0x199   :  { %3050 = vmatprep.subr.bf16.mxu1 %v3548_v32 }
 0x19a   :  { %1063 = vmatpush1.bf16.msra.mxu0 %v3688_v20 }
 0x19b   :  { %1064 = vmatprep.subr.bf16.mxu0 %v3691_v21 }
 0x19c   :  { %3051 = vmatpush3.bf16.msra.mxu1 %v3264_v19 }
 0x19d   :  { %3052 = vmatprep.subr.bf16.mxu1 %v3548_v32 }
 0x19e   :  { %1065 = vmatpush1.bf16.msra.mxu0 %v3694_v23 }
 0x19f   :  { %1066 = vmatprep.subr.bf16.mxu0 %v3697_v24 }
 0x1a0   :  { %3053 = vmatpush3.bf16.msra.mxu1 %v3265_v22 }
 0x1a1   :  { %3054 = vmatprep.subr.bf16.mxu1 %v3548_v32 }
 0x1a2   :  { %1067 = vmatpush1.bf16.msra.mxu0 %v3702_v27 }
 0x1a3   :  { %1068 = vmatprep.subr.bf16.mxu0 %v3705_v28 }
 0x1a6   :  { %1069 = vmatpush1.bf16.msra.mxu0 %v3709_v30 }
 0x1a7   :  { %1318 = vmatprep.subr.bf16.mxu0 %v3662_v2  ;;  %v3266_v2 = vld [vmem:[#allocation8 + $0x98] ss:$12 sps:$4 sm:$0xff]  }
 0x1a8   :  { %3055 = vmatpush3.bf16.msra.mxu1 %v3266_v2 }
 0x1a9   :  { %3056 = vmatprep.subr.bf16.mxu1 %v3548_v32 }
 0x1ac   :  { %3057 = vmatpush3.bf16.msra.mxu1 %v3267_v26 }
 0x1ad   :  { %3062 = vmatprep.subr.bf16.mxu1 %v3548_v32 }
 0x25c   :  { %v824_v31 = vpop.f32.mrb[4].mxu0  ;;  %v865_v35 = vpop.f32.mrb[28].mxu1 }
 0x25d   :  { %v871_v36 = vadd.f32 %v824_v31, %v3765_v60  ;;  %v826_v38 = vpop.f32.mrb[5].mxu0  ;;  %v3040_v39 = vpop.f32.mrb[29].mxu1  ;;  %v885_v56 = vadd.f32 %v3810_v29, %v865_v35 }
 0x25e   :  { %v872_v41 = vadd.f32 %v826_v38, %v3767_v62  ;;  %v828_v43 = vpop.f32.mrb[6].mxu0  ;;  %v868_v44 = vpop.f32.mrb[30].mxu1 }
 0x25f   :  { %v2727_v46 = vmul.f32 -1.442695, %v871_v36  ;;  %v829_v48 = vpop.f32.mrb[7].mxu0  ;;  %v3041_v34 = vpop.f32.mrb[31].mxu1 }
 0x260   :  { %v2728_v52 = vmul.f32 -1.442695, %v872_v41 }
 0x261   :  { %3350 = vpow2.f32 %v2727_v46 }
 0x262   :  { %3352 = vpow2.f32 %v2728_v52 }
 0x26b   :  { %v3351_v57 = vpop.eup %3350 }
 0x26c   :  { %v879_v59 = vadd.f32 1.0, %v3351_v57  ;;  %v3353_v63 = vpop.eup %3352 }
 0x26d   :  { %v880_v58 = vadd.f32 1.0, %v3353_v63 }
 0x26e   :  { %3354 = vrcp.f32 %v879_v59 }
 0x278   :  { %v3355_v50 = vpop.eup %3354 }
 0x279   :  { %v886_v60 = vmul.f32 %v3355_v50, %v885_v56  ;;  %v3893_v50 = vld [vmem:[#allocation8] ss:$12 sps:$4 sm:$0xff]  }
 0x27b   :  { %v887_v55 = vadd.f32 %v886_v60, %v3797_v3  ;;  %v3279_v60 = vld [vmem:[#allocation8 + $0x8] ss:$12 sps:$4 sm:$0xff]  }
 0x27d   :  { %3356 = vtanh.f32 %v887_v55  ;;  %v3897_v55 = vld [vmem:[#allocation8 + $0x1c] ss:$12 sps:$4 sm:$0xff]  }
 0x27e   :  { %3358 = vrcp.f32 %v880_v58  ;;  %v3900_v58 = vld [vmem:[#allocation8 + $0x18] ss:$12 sps:$4 sm:$0xff]  }
 0x287   :  { %v3357_v62 = vpop.eup %3356 }
 0x288   :  { %v889_v15 = vsub.f32 %v3813_v51, %v3357_v62  ;;  %v3359_v19 = vpop.eup %3358 }
 0x28a   :  { %v890_v22 = vmul.f32 %v3359_v19, %v889_v15  ;;  %v3904_v15 = vld [vmem:[#allocation8 + $0x34] ss:$12 sps:$4 sm:$0xff]   ;;  %v3907_v19 = vld [vmem:[#allocation8 + $0x30] ss:$12 sps:$4 sm:$0xff]  }
 0x28c   :  { %v3849_v2 = vadd.f32 %v3357_v62, %v890_v22  ;;  %v3283_v62 = vld [vmem:[#allocation8 + $0x20] ss:$12 sps:$4 sm:$0xff]   ;;  %v3287_v22 = vld [vmem:[#allocation8 + $0x38] ss:$12 sps:$4 sm:$0xff]  }
 0x28e   :  { %v892_v26 = vpack.c.bf16 %v3849_v2, %v3849_v2 }
 0x290   :  { %1087 = vmatmul.mubr.bf16.vlgmr.msra.gmra.mrb[8].mxu0 %v892_v26  ;;  %3059 = vmatmul.mubr.bf16.vlgmr.msra.gmra.mrb[32].mxu1 %v892_v26  ;;  %v3911_v26 = vld [vmem:[#allocation8 + $0x4c] ss:$12 sps:$4 sm:$0xff]  }
 0x291   :  { %1319 = vmatpush1.bf16.msra.mxu0 %v3664_v4  ;;  %1350 = vmatprep.mubr.bf16.mxu0 %v3547_v0  ;;  %v3268_v4 = vld [vmem:[#allocation8 + $0x8] ss:$12 sps:$4 sm:$0xff]  }
 0x292   :  { %1320 = vmatprep.subr.bf16.mxu0 %v3668_v6  ;;  %3078 = vmatprep.mubr.msk.bf16.mxu1 %vm3549_vm1, %v3548_v32  ;;  %v3269_v6 = vld [vmem:[#allocation8 + $0x20] ss:$12 sps:$4 sm:$0xff]  }
 0x293   :  { %3063 = vmatpush3.bf16.msra.mxu1 %v3268_v4  ;;  %v3914_v4 = vld [vmem:[#allocation8 + $0x48] ss:$12 sps:$4 sm:$0xff]  }
 0x294   :  { %3064 = vmatprep.subr.bf16.mxu1 %v3548_v32 }
 0x295   :  { %1321 = vmatpush1.bf16.msra.mxu0 %v3670_v8  ;;  %v3270_v8 = vld [vmem:[#allocation8 + $0x38] ss:$12 sps:$4 sm:$0xff]  }
 0x296   :  { %1322 = vmatprep.subr.bf16.mxu0 %v3673_v10  ;;  %v3271_v10 = vld [vmem:[#allocation8 + $0x50] ss:$12 sps:$4 sm:$0xff]  }
 0x297   :  { %3065 = vmatpush3.bf16.msra.mxu1 %v3269_v6  ;;  %v3291_v6 = vld [vmem:[#allocation8 + $0x50] ss:$12 sps:$4 sm:$0xff]  }
 0x298   :  { %3066 = vmatprep.subr.bf16.mxu1 %v3548_v32 }
 0x299   :  { %1323 = vmatpush1.bf16.msra.mxu0 %v3675_v12  ;;  %v3272_v12 = vld [vmem:[#allocation8 + $0x68] ss:$12 sps:$4 sm:$0xff]  }
 0x29a   :  { %1324 = vmatprep.subr.bf16.mxu0 %v3679_v14  ;;  %v3273_v14 = vld [vmem:[#allocation8 + $0x80] ss:$12 sps:$4 sm:$0xff]  }
 0x29b   :  { %3067 = vmatpush3.bf16.msra.mxu1 %v3270_v8  ;;  %v3918_v8 = vld [vmem:[#allocation8 + $0x60] ss:$12 sps:$4 sm:$0xff]  }
 0x29c   :  { %3068 = vmatprep.subr.bf16.mxu1 %v3548_v32 }
 0x29d   :  { %1325 = vmatpush1.bf16.msra.mxu0 %v3682_v16  ;;  %v3274_v16 = vld [vmem:[#allocation8 + $0x98] ss:$12 sps:$4 sm:$0xff]  }
 0x29e   :  { %1326 = vmatprep.subr.bf16.mxu0 %v3685_v18  ;;  %v3275_v18 = vld [vmem:[#allocation8 + $0xb0] ss:$12 sps:$4 sm:$0xff]  }
 0x29f   :  { %3069 = vmatpush3.bf16.msra.mxu1 %v3271_v10  ;;  %v3920_v10 = vld [vmem:[#allocation8 + $0x64] ss:$12 sps:$4 sm:$0xff]  }
 0x2a0   :  { %3070 = vmatprep.subr.bf16.mxu1 %v3548_v32 }
 0x2a1   :  { %1327 = vmatpush1.bf16.msra.mxu0 %v3688_v20 }
 0x2a2   :  { %1328 = vmatprep.subr.bf16.mxu0 %v3691_v21 }
 0x2a3   :  { %3071 = vmatpush3.bf16.msra.mxu1 %v3272_v12  ;;  %v3295_v12 = vld [vmem:[#allocation8 + $0x68] ss:$12 sps:$4 sm:$0xff]  }
 0x2a4   :  { %3072 = vmatprep.subr.bf16.mxu1 %v3548_v32 }
 0x2a5   :  { %1329 = vmatpush1.bf16.msra.mxu0 %v3694_v23 }
 0x2a6   :  { %1330 = vmatprep.subr.bf16.mxu0 %v3697_v24 }
 0x2a7   :  { %3073 = vmatpush3.bf16.msra.mxu1 %v3273_v14  ;;  %v3923_v14 = vld [vmem:[#allocation8 + $0x7c] ss:$12 sps:$4 sm:$0xff]  }
 0x2a8   :  { %3074 = vmatprep.subr.bf16.mxu1 %v3548_v32 }
 0x2a9   :  { %1331 = vmatpush1.bf16.msra.mxu0 %v3702_v27 }
 0x2aa   :  { %1332 = vmatprep.subr.bf16.mxu0 %v3705_v28 }
 0x2ab   :  { %3075 = vmatpush3.bf16.msra.mxu1 %v3274_v16  ;;  %v3927_v16 = vld [vmem:[#allocation8 + $0x78] ss:$12 sps:$4 sm:$0xff]  }
 0x2ac   :  { %3076 = vmatprep.subr.bf16.mxu1 %v3548_v32 }
 0x2ad   :  { %1333 = vmatpush1.bf16.msra.mxu0 %v3709_v30 }
 0x2af   :  { %3077 = vmatpush3.bf16.msra.mxu1 %v3275_v18  ;;  %v3299_v18 = vld [vmem:[#allocation8 + $0x80] ss:$12 sps:$4 sm:$0xff]  }
 0x2b0   :  { %3082 = vmatprep.subr.bf16.mxu1 %v3548_v32 }
 0x363   :  { %v1088_v20 = vpop.f32.mrb[8].mxu0  ;;  %v1129_v21 = vpop.f32.mrb[32].mxu1 }
 0x364   :  { %v1135_v23 = vadd.f32 %v1088_v20, %v3769_v1  ;;  %v1090_v24 = vpop.f32.mrb[9].mxu0  ;;  %v3060_v27 = vpop.f32.mrb[33].mxu1  ;;  %v1149_v44 = vadd.f32 %v3810_v29, %v1129_v21  ;;  %v3931_v20 = vld [vmem:[#allocation8 + $0x94] ss:$12 sps:$4 sm:$0xff]   ;;  %v3934_v21 = vld [vmem:[#allocation8 + $0x90] ss:$12 sps:$4 sm:$0xff]  }
 0x365   :  { %v1136_v28 = vadd.f32 %v1090_v24, %v3771_v5  ;;  %v1092_v30 = vpop.f32.mrb[10].mxu0  ;;  %v1132_v3 = vpop.f32.mrb[34].mxu1  ;;  %v3938_v24 = vld [vmem:[#allocation8 + $0xac] ss:$12 sps:$4 sm:$0xff]   ;;  %v3941_v27 = vld [vmem:[#allocation8 + $0xa8] ss:$12 sps:$4 sm:$0xff]  }
 0x366   :  { %v2753_v31 = vmul.f32 -1.442695, %v1135_v23  ;;  %v1093_v35 = vpop.f32.mrb[11].mxu0  ;;  %v3061_v36 = vpop.f32.mrb[35].mxu1  ;;  %v3303_v23 = vld [vmem:[#allocation8 + $0x98] ss:$12 sps:$4 sm:$0xff]  }
 0x367   :  { %v2754_v38 = vmul.f32 -1.442695, %v1136_v28  ;;  %v3307_v28 = vld [vmem:[#allocation8 + $0xb0] ss:$12 sps:$4 sm:$0xff]  }
 0x368   :  { %3360 = vpow2.f32 %v2753_v31 }
 0x369   :  { %3362 = vpow2.f32 %v2754_v38 }
 0x372   :  { %v3361_v39 = vpop.eup %3360 }
 0x373   :  { %v1143_v41 = vadd.f32 1.0, %v3361_v39  ;;  %v3363_v43 = vpop.eup %3362 }
 0x374   :  { %v1144_v34 = vadd.f32 1.0, %v3363_v43 }
 0x375   :  { %3364 = vrcp.f32 %v1143_v41 }
 0x37f   :  { %v3365_v46 = vpop.eup %3364 }
 0x380   :  { %v1150_v1 = vmul.f32 %v3365_v46, %v1149_v44 }
 0x382   :  { %v1151_v48 = vadd.f32 %v1150_v1, %v3793_v54  ;;  %v3891_v54 = vld [vmem:[#allocation8 + $0x4] ss:$12 sps:$4 sm:$0xff]  }
 0x383   :  { %1582 = vmatprep.subr.bf16.mxu0 %v3891_v54 }
 0x384   :  { %3366 = vtanh.f32 %v1151_v48 }
 0x385   :  { %3368 = vrcp.f32 %v1144_v34 }
 0x38e   :  { %v3367_v5 = vpop.eup %3366 }
 0x38f   :  { %v1153_v52 = vsub.f32 %v3849_v2, %v3367_v5  ;;  %v3369_v57 = vpop.eup %3368 }
 0x391   :  { %v1154_v59 = vmul.f32 %v3369_v57, %v1153_v52 }
 0x393   :  { %v3884_v63 = vadd.f32 %v3367_v5, %v1154_v59 }
 0x395   :  { %v1156_v56 = vpack.c.bf16 %v3884_v63, %v3884_v63 }
 0x397   :  { %1351 = vmatmul.mubr.bf16.vlgmr.msra.gmra.mrb[12].mxu0 %v1156_v56  ;;  %3079 = vmatmul.mubr.bf16.vlgmr.msra.gmra.mrb[36].mxu1 %v1156_v56 }
 0x398   :  { %1614 = vmatprep.mubr.bf16.mxu0 %v3547_v0  ;;  %3098 = vmatprep.mubr.msk.bf16.mxu1 %vm3549_vm1, %v3548_v32 }
 0x399   :  { %1583 = vmatpush1.bf16.msra.mxu0 %v3893_v50  ;;  %3083 = vmatpush3.bf16.msra.mxu1 %v3279_v60 }
 0x39a   :  { %3084 = vmatprep.subr.bf16.mxu1 %v3548_v32  ;;  %1584 = vmatprep.subr.bf16.mxu0 %v3897_v55 }
 0x39d   :  { %1585 = vmatpush1.bf16.msra.mxu0 %v3900_v58  ;;  %3085 = vmatpush3.bf16.msra.mxu1 %v3283_v62 }
 0x39e   :  { %3086 = vmatprep.subr.bf16.mxu1 %v3548_v32  ;;  %1586 = vmatprep.subr.bf16.mxu0 %v3904_v15 }
 0x3a1   :  { %1587 = vmatpush1.bf16.msra.mxu0 %v3907_v19  ;;  %3087 = vmatpush3.bf16.msra.mxu1 %v3287_v22 }
 0x3a2   :  { %3088 = vmatprep.subr.bf16.mxu1 %v3548_v32  ;;  %1588 = vmatprep.subr.bf16.mxu0 %v3911_v26 }
 0x3a5   :  { %1589 = vmatpush1.bf16.msra.mxu0 %v3914_v4  ;;  %3089 = vmatpush3.bf16.msra.mxu1 %v3291_v6 }
 0x3a6   :  { %3090 = vmatprep.subr.bf16.mxu1 %v3548_v32  ;;  %1590 = vmatprep.subr.bf16.mxu0 %v3920_v10 }
 0x3a9   :  { %1591 = vmatpush1.bf16.msra.mxu0 %v3918_v8  ;;  %3091 = vmatpush3.bf16.msra.mxu1 %v3295_v12 }
 0x3aa   :  { %1592 = vmatprep.subr.bf16.mxu0 %v3923_v14  ;;  %3092 = vmatprep.subr.bf16.mxu1 %v3548_v32 }
 0x3ad   :  { %1593 = vmatpush1.bf16.msra.mxu0 %v3927_v16  ;;  %3093 = vmatpush3.bf16.msra.mxu1 %v3299_v18  ;;  %v3309_v18 = vld [vmem:[#allocation8 + $0x20] ss:$12 sps:$4 sm:$0xff]  }
 0x3ae   :  { %1594 = vmatprep.subr.bf16.mxu0 %v3931_v20  ;;  %3094 = vmatprep.subr.bf16.mxu1 %v3548_v32 }
 0x3b1   :  { %1595 = vmatpush1.bf16.msra.mxu0 %v3934_v21  ;;  %3095 = vmatpush3.bf16.msra.mxu1 %v3303_v23  ;;  %v3310_v23 = vld [vmem:[#allocation8 + $0x38] ss:$12 sps:$4 sm:$0xff]  }
 0x3b2   :  { %1596 = vmatprep.subr.bf16.mxu0 %v3938_v24  ;;  %3096 = vmatprep.subr.bf16.mxu1 %v3548_v32 }
 0x3b5   :  { %1597 = vmatpush1.bf16.msra.mxu0 %v3941_v27  ;;  %3097 = vmatpush3.bf16.msra.mxu1 %v3307_v28  ;;  %v3311_v28 = vld [vmem:[#allocation8 + $0x50] ss:$12 sps:$4 sm:$0xff]  }
 0x3b6   :  { %1846 = vmatprep.subr.bf16.mxu0 %v3891_v54  ;;  %3102 = vmatprep.subr.bf16.mxu1 %v3548_v32 }
 0x46a   :  { %v1352_v30 = vpop.f32.mrb[12].mxu0  ;;  %v1393_v3 = vpop.f32.mrb[36].mxu1 }
 0x46b   :  { %v1399_v31 = vadd.f32 %v1352_v30, %v3773_v9  ;;  %v1354_v35 = vpop.f32.mrb[13].mxu0  ;;  %v3080_v36 = vpop.f32.mrb[37].mxu1  ;;  %v1413_v52 = vadd.f32 %v3810_v29, %v1393_v3  ;;  %v3312_v30 = vld [vmem:[#allocation8 + $0x68] ss:$12 sps:$4 sm:$0xff]   ;;  %v3313_v3 = vld [vmem:[#allocation8 + $0x80] ss:$12 sps:$4 sm:$0xff]  }
 0x46c   :  { %v1400_v38 = vadd.f32 %v1354_v35, %v3775_v13  ;;  %v1356_v39 = vpop.f32.mrb[14].mxu0  ;;  %v1396_v41 = vpop.f32.mrb[38].mxu1  ;;  %v3315_v35 = vld [vmem:[#allocation8 + $0xb0] ss:$12 sps:$4 sm:$0xff]  }
 0x46d   :  { %v2779_v43 = vmul.f32 -1.442695, %v1399_v31  ;;  %v1357_v44 = vpop.f32.mrb[15].mxu0  ;;  %v3081_v46 = vpop.f32.mrb[39].mxu1  ;;  %v3314_v31 = vld [vmem:[#allocation8 + $0x98] ss:$12 sps:$4 sm:$0xff]  }
 0x46e   :  { %v2780_v1 = vmul.f32 -1.442695, %v1400_v38 }
 0x46f   :  { %3370 = vpow2.f32 %v2779_v43 }
 0x470   :  { %3372 = vpow2.f32 %v2780_v1 }
 0x479   :  { %v3371_v48 = vpop.eup %3370 }
 0x47a   :  { %v1407_v34 = vadd.f32 1.0, %v3371_v48  ;;  %v3373_v5 = vpop.eup %3372 }
 0x47b   :  { %v1408_v56 = vadd.f32 1.0, %v3373_v5 }
 0x47c   :  { %3374 = vrcp.f32 %v1407_v34 }
 0x486   :  { %v3375_v57 = vpop.eup %3374 }
 0x487   :  { %v1414_v9 = vmul.f32 %v3375_v57, %v1413_v52 }
 0x489   :  { %v1415_v59 = vadd.f32 %v1414_v9, %v3795_v61  ;;  %v3308_v61 = vld [vmem:[#allocation8 + $0x8] ss:$12 sps:$4 sm:$0xff]  }
 0x48b   :  { %3376 = vtanh.f32 %v1415_v59 }
 0x48c   :  { %3378 = vrcp.f32 %v1408_v56 }
 0x495   :  { %v3377_v13 = vpop.eup %3376 }
 0x496   :  { %v1417_v60 = vsub.f32 %v3884_v63, %v3377_v13  ;;  %v3379_v62 = vpop.eup %3378 }
 0x498   :  { %v1418_v22 = vmul.f32 %v3379_v62, %v1417_v60 }
 0x49a   :  { %v3953_v6 = vadd.f32 %v3377_v13, %v1418_v22 }
 0x49c   :  { %v1420_v12 = vpack.c.bf16 %v3953_v6, %v3953_v6 }
 0x49e   :  { %1615 = vmatmul.mubr.bf16.vlgmr.msra.gmra.mrb[16].mxu0 %v1420_v12  ;;  %3099 = vmatmul.mubr.bf16.vlgmr.msra.gmra.mrb[40].mxu1 %v1420_v12 }
 0x49f   :  { %1847 = vmatpush1.bf16.msra.mxu0 %v3893_v50  ;;  %1878 = vmatprep.mubr.bf16.mxu0 %v3547_v0 }
 0x4a0   :  { %1848 = vmatprep.subr.bf16.mxu0 %v3897_v55  ;;  %3118 = vmatprep.mubr.msk.bf16.mxu1 %vm3549_vm1, %v3548_v32 }
 0x4a1   :  { %3103 = vmatpush3.bf16.msra.mxu1 %v3308_v61 }
 0x4a2   :  { %3104 = vmatprep.subr.bf16.mxu1 %v3548_v32 }
 0x4a3   :  { %1849 = vmatpush1.bf16.msra.mxu0 %v3900_v58 }
 0x4a4   :  { %1850 = vmatprep.subr.bf16.mxu0 %v3904_v15 }
 0x4a5   :  { %3105 = vmatpush3.bf16.msra.mxu1 %v3309_v18 }
 0x4a6   :  { %3106 = vmatprep.subr.bf16.mxu1 %v3548_v32 }
 0x4a7   :  { %1851 = vmatpush1.bf16.msra.mxu0 %v3907_v19 }
 0x4a8   :  { %1852 = vmatprep.subr.bf16.mxu0 %v3911_v26 }
 0x4a9   :  { %3107 = vmatpush3.bf16.msra.mxu1 %v3310_v23 }
 0x4aa   :  { %3108 = vmatprep.subr.bf16.mxu1 %v3548_v32 }
 0x4ab   :  { %1853 = vmatpush1.bf16.msra.mxu0 %v3914_v4 }
 0x4ac   :  { %1854 = vmatprep.subr.bf16.mxu0 %v3920_v10 }
 0x4ad   :  { %3109 = vmatpush3.bf16.msra.mxu1 %v3311_v28  ;;  %v3317_v28 = vld [vmem:[#allocation8 + $0x20] ss:$12 sps:$4 sm:$0xff]  }
 0x4ae   :  { %3110 = vmatprep.subr.bf16.mxu1 %v3548_v32 }
 0x4af   :  { %1855 = vmatpush1.bf16.msra.mxu0 %v3918_v8 }
 0x4b0   :  { %1856 = vmatprep.subr.bf16.mxu0 %v3923_v14 }
 0x4b1   :  { %3111 = vmatpush3.bf16.msra.mxu1 %v3312_v30  ;;  %v3318_v30 = vld [vmem:[#allocation8 + $0x38] ss:$12 sps:$4 sm:$0xff]  }
 0x4b2   :  { %3112 = vmatprep.subr.bf16.mxu1 %v3548_v32 }
 0x4b3   :  { %1857 = vmatpush1.bf16.msra.mxu0 %v3927_v16 }
 0x4b4   :  { %1858 = vmatprep.subr.bf16.mxu0 %v3931_v20 }
 0x4b5   :  { %3113 = vmatpush3.bf16.msra.mxu1 %v3313_v3  ;;  %v3319_v3 = vld [vmem:[#allocation8 + $0x50] ss:$12 sps:$4 sm:$0xff]  }
 0x4b6   :  { %3114 = vmatprep.subr.bf16.mxu1 %v3548_v32 }
 0x4b7   :  { %1859 = vmatpush1.bf16.msra.mxu0 %v3934_v21 }
 0x4b8   :  { %1860 = vmatprep.subr.bf16.mxu0 %v3938_v24 }
 0x4b9   :  { %3115 = vmatpush3.bf16.msra.mxu1 %v3314_v31  ;;  %v3320_v31 = vld [vmem:[#allocation8 + $0x68] ss:$12 sps:$4 sm:$0xff]  }
 0x4ba   :  { %3116 = vmatprep.subr.bf16.mxu1 %v3548_v32 }
 0x4bb   :  { %1861 = vmatpush1.bf16.msra.mxu0 %v3941_v27 }
 0x4bc   :  { %2110 = vmatprep.subr.bf16.mxu0 %v3891_v54 }
 0x4bd   :  { %3117 = vmatpush3.bf16.msra.mxu1 %v3315_v35  ;;  %v3321_v35 = vld [vmem:[#allocation8 + $0x80] ss:$12 sps:$4 sm:$0xff]  }
 0x4be   :  { %3122 = vmatprep.subr.bf16.mxu1 %v3548_v32 }
 0x571   :  { %v1616_v36 = vpop.f32.mrb[16].mxu0  ;;  %v1657_v38 = vpop.f32.mrb[40].mxu1 }
 0x572   :  { %v1663_v39 = vadd.f32 %v1616_v36, %v3777_v25  ;;  %v1618_v41 = vpop.f32.mrb[17].mxu0  ;;  %v3100_v43 = vpop.f32.mrb[41].mxu1  ;;  %v1677_v56 = vadd.f32 %v3810_v29, %v1657_v38  ;;  %v3323_v36 = vld [vmem:[#allocation8 + $0xb0] ss:$12 sps:$4 sm:$0xff]  }
 0x573   :  { %v1664_v44 = vadd.f32 %v1618_v41, %v3779_v33  ;;  %v1620_v46 = vpop.f32.mrb[18].mxu0  ;;  %v1660_v1 = vpop.f32.mrb[42].mxu1 }
 0x574   :  { %v2805_v48 = vmul.f32 -1.442695, %v1663_v39  ;;  %v1621_v34 = vpop.f32.mrb[19].mxu0  ;;  %v3101_v5 = vpop.f32.mrb[43].mxu1 }
 0x575   :  { %v2806_v52 = vmul.f32 -1.442695, %v1664_v44 }
 0x576   :  { %3380 = vpow2.f32 %v2805_v48 }
 0x577   :  { %3382 = vpow2.f32 %v2806_v52 }
 0x580   :  { %v3381_v57 = vpop.eup %3380 }
 0x581   :  { %v1671_v9 = vadd.f32 1.0, %v3381_v57  ;;  %v3383_v59 = vpop.eup %3382 }
 0x582   :  { %v1672_v62 = vadd.f32 1.0, %v3383_v59 }
 0x583   :  { %3384 = vrcp.f32 %v1671_v9 }
 0x58d   :  { %v3385_v13 = vpop.eup %3384 }
 0x58e   :  { %v1678_v25 = vmul.f32 %v3385_v13, %v1677_v56 }
 0x590   :  { %v1679_v60 = vadd.f32 %v1678_v25, %v3801_v11  ;;  %v3316_v11 = vld [vmem:[#allocation8 + $0x8] ss:$12 sps:$4 sm:$0xff]  }
 0x592   :  { %3386 = vtanh.f32 %v1679_v60 }
 0x593   :  { %3388 = vrcp.f32 %v1672_v62 }
 0x59c   :  { %v3387_v33 = vpop.eup %3386 }
 0x59d   :  { %v1681_v22 = vsub.f32 %v3953_v6, %v3387_v33  ;;  %v3389_v12 = vpop.eup %3388 }
 0x59f   :  { %v1682_v61 = vmul.f32 %v3389_v12, %v1681_v22 }
 0x5a1   :  { %v3989_v18 = vadd.f32 %v3387_v33, %v1682_v61 }
 0x5a3   :  { %v1684_v23 = vpack.c.bf16 %v3989_v18, %v3989_v18 }
 0x5a5   :  { %1879 = vmatmul.mubr.bf16.vlgmr.msra.gmra.mrb[20].mxu0 %v1684_v23  ;;  %3119 = vmatmul.mubr.bf16.vlgmr.msra.gmra.mrb[44].mxu1 %v1684_v23 }
 0x5a6   :  { %2111 = vmatpush1.bf16.msra.mxu0 %v3893_v50  ;;  %2142 = vmatprep.mubr.bf16.mxu0 %v3547_v0 }
 0x5a7   :  { %2112 = vmatprep.subr.bf16.mxu0 %v3897_v55  ;;  %3138 = vmatprep.mubr.msk.bf16.mxu1 %vm3549_vm1, %v3548_v32 }
 0x5a8   :  { %3123 = vmatpush3.bf16.msra.mxu1 %v3316_v11 }
 0x5a9   :  { %3124 = vmatprep.subr.bf16.mxu1 %v3548_v32 }
 0x5aa   :  { %2113 = vmatpush1.bf16.msra.mxu0 %v3900_v58 }
 0x5ab   :  { %2114 = vmatprep.subr.bf16.mxu0 %v3904_v15 }
 0x5ac   :  { %3125 = vmatpush3.bf16.msra.mxu1 %v3317_v28 }
 0x5ad   :  { %3126 = vmatprep.subr.bf16.mxu1 %v3548_v32 }
 0x5ae   :  { %2115 = vmatpush1.bf16.msra.mxu0 %v3907_v19 }
 0x5af   :  { %2116 = vmatprep.subr.bf16.mxu0 %v3911_v26 }
 0x5b0   :  { %3127 = vmatpush3.bf16.msra.mxu1 %v3318_v30 }
 0x5b1   :  { %3128 = vmatprep.subr.bf16.mxu1 %v3548_v32 }
 0x5b2   :  { %2117 = vmatpush1.bf16.msra.mxu0 %v3914_v4 }
 0x5b3   :  { %2118 = vmatprep.subr.bf16.mxu0 %v3920_v10 }
 0x5b4   :  { %3129 = vmatpush3.bf16.msra.mxu1 %v3319_v3 }
 0x5b5   :  { %3130 = vmatprep.subr.bf16.mxu1 %v3548_v32 }
 0x5b6   :  { %2119 = vmatpush1.bf16.msra.mxu0 %v3918_v8 }
 0x5b7   :  { %2120 = vmatprep.subr.bf16.mxu0 %v3923_v14 }
 0x5b8   :  { %3131 = vmatpush3.bf16.msra.mxu1 %v3320_v31 }
 0x5b9   :  { %3132 = vmatprep.subr.bf16.mxu1 %v3548_v32 }
 0x5ba   :  { %2121 = vmatpush1.bf16.msra.mxu0 %v3927_v16 }
 0x5bb   :  { %2122 = vmatprep.subr.bf16.mxu0 %v3931_v20 }
 0x5bc   :  { %3133 = vmatpush3.bf16.msra.mxu1 %v3321_v35 }
 0x5bd   :  { %3134 = vmatprep.subr.bf16.mxu1 %v3548_v32 }
 0x5be   :  { %2123 = vmatpush1.bf16.msra.mxu0 %v3934_v21 }
 0x5bf   :  { %2124 = vmatprep.subr.bf16.mxu0 %v3938_v24 }
 0x5c2   :  { %2125 = vmatpush1.bf16.msra.mxu0 %v3941_v27 }
 0x5c3   :  { %2374 = vmatprep.subr.bf16.mxu0 %v3891_v54  ;;  %v3322_v54 = vld [vmem:[#allocation8 + $0x98] ss:$12 sps:$4 sm:$0xff]  }
 0x5c4   :  { %3135 = vmatpush3.bf16.msra.mxu1 %v3322_v54 }
 0x5c5   :  { %3136 = vmatprep.subr.bf16.mxu1 %v3548_v32 }
 0x5c8   :  { %3137 = vmatpush3.bf16.msra.mxu1 %v3323_v36 }
 0x5c9   :  { %3142 = vmatprep.subr.bf16.mxu1 %v3548_v32 }
 0x678   :  { %v1880_v38 = vpop.f32.mrb[20].mxu0  ;;  %v1921_v39 = vpop.f32.mrb[44].mxu1 }
 0x679   :  { %v1927_v41 = vadd.f32 %v1880_v38, %v3781_v37  ;;  %v1882_v43 = vpop.f32.mrb[21].mxu0  ;;  %v3120_v44 = vpop.f32.mrb[45].mxu1  ;;  %v1941_v13 = vadd.f32 %v3810_v29, %v1921_v39 }
 0x67a   :  { %v1928_v46 = vadd.f32 %v1882_v43, %v3783_v40  ;;  %v1884_v1 = vpop.f32.mrb[22].mxu0  ;;  %v1924_v48 = vpop.f32.mrb[46].mxu1 }
 0x67b   :  { %v2831_v34 = vmul.f32 -1.442695, %v1927_v41  ;;  %v1885_v5 = vpop.f32.mrb[23].mxu0  ;;  %v3121_v52 = vpop.f32.mrb[47].mxu1  ;;  %v3333_v48 = vld [vmem:[#allocation9 + $0x8] sm:$0xff]  }
 0x67c   :  { %v2832_v57 = vmul.f32 -1.442695, %v1928_v46  ;;  %v3336_v5 = vld [vmem:[#allocation9 + $0x20] sm:$0xff]   ;;  %v3337_v52 = vld [vmem:[#allocation9 + $0x28] sm:$0xff]  }
 0x67d   :  { %3390 = vpow2.f32 %v2831_v34  ;;  %v3335_v34 = vld [vmem:[#allocation9 + $0x18] sm:$0xff]  }
 0x67e   :  { %3392 = vpow2.f32 %v2832_v57  ;;  %v3338_v57 = vld [vmem:[#allocation9 + $0x30] sm:$0xff]  }
 0x687   :  { %v3391_v9 = vpop.eup %3390 }
 0x688   :  { %v1935_v59 = vadd.f32 1.0, %v3391_v9  ;;  %v3393_v56 = vpop.eup %3392 }
 0x689   :  { %v1936_v62 = vadd.f32 1.0, %v3393_v56 }
 0x68a   :  { %3394 = vrcp.f32 %v1935_v59 }
 0x694   :  { %v3395_v25 = vpop.eup %3394 }
 0x695   :  { %v1942_v37 = vmul.f32 %v3395_v25, %v1941_v13 }
 0x697   :  { %v1943_v60 = vadd.f32 %v1942_v37, %v3805_v17  ;;  %v3325_v17 = vld [vmem:[#allocation8 + $0x20] ss:$12 sps:$4 sm:$0xff]  }
 0x699   :  { %3396 = vtanh.f32 %v1943_v60 }
 0x69a   :  { %3398 = vrcp.f32 %v1936_v62 }
 0x6a3   :  { %v3397_v40 = vpop.eup %3396 }
 0x6a4   :  { %v1945_v33 = vsub.f32 %v3989_v18, %v3397_v40  ;;  %v3399_v22 = vpop.eup %3398 }
 0x6a6   :  { %v1946_v12 = vmul.f32 %v3399_v22, %v1945_v33 }
 0x6a8   :  { %v4025_v61 = vadd.f32 %v3397_v40, %v1946_v12 }
 0x6aa   :  { %v1948_v23 = vpack.c.bf16 %v4025_v61, %v4025_v61  ;;  %v2487_v9 = vpack.c.bf16 %v4025_v61, %v3989_v18 }
 0x6ac   :  { %2143 = vmatmul.mubr.bf16.vlgmr.msra.gmra.mrb[24].mxu0 %v1948_v23  ;;  %3139 = vmatmul.mubr.bf16.vlgmr.msra.gmra.mrb[48].mxu1 %v1948_v23 }
 0x6ad   :  { %2375 = vmatpush1.bf16.msra.mxu0 %v3893_v50  ;;  %2406 = vmatprep.mubr.bf16.mxu0 %v3547_v0  ;;  %v3324_v0 = vld [vmem:[#allocation8 + $0x8] ss:$12 sps:$4 sm:$0xff]   ;;  %v3326_v50 = vld [vmem:[#allocation8 + $0x38] ss:$12 sps:$4 sm:$0xff]  }
 0x6ae   :  { %2376 = vmatprep.subr.bf16.mxu0 %v3897_v55  ;;  %3158 = vmatprep.mubr.msk.bf16.mxu1 %vm3549_vm1, %v3548_v32  ;;  %v3327_v55 = vld [vmem:[#allocation8 + $0x50] ss:$12 sps:$4 sm:$0xff]  }
 0x6af   :  { %3143 = vmatpush3.bf16.msra.mxu1 %v3324_v0 }
 0x6b0   :  { %3144 = vmatprep.subr.bf16.mxu1 %v3548_v32 }
 0x6b1   :  { %2377 = vmatpush1.bf16.msra.mxu0 %v3900_v58  ;;  %v3328_v58 = vld [vmem:[#allocation8 + $0x68] ss:$12 sps:$4 sm:$0xff]  }
 0x6b2   :  { %2378 = vmatprep.subr.bf16.mxu0 %v3904_v15  ;;  %v3332_v15 = vld [vmem:[#allocation9] sm:$0xff]  }
 0x6b3   :  { %3145 = vmatpush3.bf16.msra.mxu1 %v3325_v17 }
 0x6b4   :  { %3146 = vmatprep.subr.bf16.mxu1 %v3548_v32 }
 0x6b5   :  { %2379 = vmatpush1.bf16.msra.mxu0 %v3907_v19  ;;  %v3329_v19 = vld [vmem:[#allocation8 + $0x80] ss:$12 sps:$4 sm:$0xff]  }
 0x6b6   :  { %2380 = vmatprep.subr.bf16.mxu0 %v3911_v26  ;;  %v3330_v26 = vld [vmem:[#allocation8 + $0x98] ss:$12 sps:$4 sm:$0xff]  }
 0x6b7   :  { %3147 = vmatpush3.bf16.msra.mxu1 %v3326_v50 }
 0x6b8   :  { %3148 = vmatprep.subr.bf16.mxu1 %v3548_v32 }
 0x6b9   :  { %2381 = vmatpush1.bf16.msra.mxu0 %v3914_v4  ;;  %v3331_v4 = vld [vmem:[#allocation8 + $0xb0] ss:$12 sps:$4 sm:$0xff]  }
 0x6ba   :  { %2382 = vmatprep.subr.bf16.mxu0 %v3920_v10 }
 0x6bb   :  { %3149 = vmatpush3.bf16.msra.mxu1 %v3327_v55 }
 0x6bc   :  { %3150 = vmatprep.subr.bf16.mxu1 %v3548_v32 }
 0x6bd   :  { %2383 = vmatpush1.bf16.msra.mxu0 %v3918_v8 }
 0x6be   :  { %2384 = vmatprep.subr.bf16.mxu0 %v3923_v14 }
 0x6bf   :  { %3151 = vmatpush3.bf16.msra.mxu1 %v3328_v58 }
 0x6c0   :  { %3152 = vmatprep.subr.bf16.mxu1 %v3548_v32 }
 0x6c1   :  { %2385 = vmatpush1.bf16.msra.mxu0 %v3927_v16 }
 0x6c2   :  { %2386 = vmatprep.subr.bf16.mxu0 %v3931_v20 }
 0x6c3   :  { %3153 = vmatpush3.bf16.msra.mxu1 %v3329_v19 }
 0x6c4   :  { %3154 = vmatprep.subr.bf16.mxu1 %v3548_v32 }
 0x6c5   :  { %2387 = vmatpush1.bf16.msra.mxu0 %v3934_v21 }
 0x6c6   :  { %2388 = vmatprep.subr.bf16.mxu0 %v3938_v24 }
 0x6c7   :  { %3155 = vmatpush3.bf16.msra.mxu1 %v3330_v26 }
 0x6c8   :  { %3156 = vmatprep.subr.bf16.mxu1 %v3548_v32 }
 0x6c9   :  { %2389 = vmatpush1.bf16.msra.mxu0 %v3941_v27 }
 0x6ca   :  { %3162 = vmatprep.subr.bf16.mxu0 %v3332_v15 }
 0x6cb   :  { %3157 = vmatpush3.bf16.msra.mxu1 %v3331_v4 }
 0x77f   :  { %v2144_v8 = vpop.f32.mrb[24].mxu0  ;;  %v2185_v10 = vpop.f32.mrb[48].mxu1 }
 0x780   :  { %v2191_v14 = vadd.f32 %v2144_v8, %v3785_v42  ;;  %v2146_v16 = vpop.f32.mrb[25].mxu0  ;;  %v3140_v20 = vpop.f32.mrb[49].mxu1  ;;  %v2205_v54 = vadd.f32 %v3810_v29, %v2185_v10  ;;  %v2485_v29 = vpack.c.bf16 %v3849_v2, %v3813_v51  ;;  %v3339_v51 = vld [vmem:[#allocation9 + $0x38] sm:$0xff]   ;;  %v2486_v2 = vpack.c.bf16 %v3953_v6, %v3884_v63 }
 0x781   :  { %v2192_v21 = vadd.f32 %v2146_v16, %v3787_v45  ;;  %v2148_v24 = vpop.f32.mrb[26].mxu0  ;;  %v2188_v27 = vpop.f32.mrb[50].mxu1 }
 0x782   :  { %v2857_v11 = vmul.f32 -1.442695, %v2191_v14  ;;  %v2149_v28 = vpop.f32.mrb[27].mxu0  ;;  %v3141_v30 = vpop.f32.mrb[51].mxu1 }
 0x783   :  { %v2858_v3 = vmul.f32 -1.442695, %v2192_v21 }
 0x784   :  { %3400 = vpow2.f32 %v2857_v11 }
 0x785   :  { %3402 = vpow2.f32 %v2858_v3 }
 0x78e   :  { %v3401_v31 = vpop.eup %3400 }
 0x78f   :  { %v2199_v35 = vadd.f32 1.0, %v3401_v31  ;;  %v3403_v32 = vpop.eup %3402 }
 0x790   :  { %v2200_v39 = vadd.f32 1.0, %v3403_v32 }
 0x791   :  { %3404 = vrcp.f32 %v2199_v35 }
 0x79b   :  { %v3405_v36 = vpop.eup %3404 }
 0x79c   :  { %v2206_v42 = vmul.f32 %v3405_v36, %v2205_v54 }
 0x79e   :  { %v2207_v38 = vadd.f32 %v2206_v42, %v3799_v7  ;;  %v3334_v7 = vld [vmem:[#allocation9 + $0x10] sm:$0xff]  }
 0x7a0   :  { %3406 = vtanh.f32 %v2207_v38 }
 0x7a1   :  { %3408 = vrcp.f32 %v2200_v39 }
 0x7aa   :  { %v3407_v45 = vpop.eup %3406 }
 0x7ab   :  { %v2209_v41 = vsub.f32 %v4025_v61, %v3407_v45  ;;  %v3409_v43 = vpop.eup %3408 }
 0x7ad   :  { %v2210_v44 = vmul.f32 %v3409_v43, %v2209_v41 }
 0x7af   :  { %v4059_v46 = vadd.f32 %v3407_v45, %v2210_v44 }
 0x7b1   :  { %v2212_v1 = vpack.c.bf16 %v4059_v46, %v4059_v46 }
 0x7b3   :  { %2407 = vmatmul.mubr.bf16.vlgmr.msra.gmra.mrb[28].mxu0 %v2212_v1  ;;  %3159 = vmatmul.mubr.bf16.vlgmr.msra.gmra.mrb[52].mxu1 %v2212_v1 }
 0x7b4   :  { %3163 = vmatpush3.bf16.msra.mxu0 %v3332_v15  ;;  %3178 = vmatprep.mubr.bf16.mxu0 %v2485_v29 }
 0x7b5   :  { %3164 = vmatprep.subr.bf16.mxu0 %v3333_v48 }
 0x7b8   :  { %3165 = vmatpush3.bf16.msra.mxu0 %v3333_v48 }
 0x7b9   :  { %3166 = vmatprep.subr.bf16.mxu0 %v3334_v7 }
 0x7bc   :  { %3167 = vmatpush3.bf16.msra.mxu0 %v3334_v7 }
 0x7bd   :  { %3168 = vmatprep.subr.bf16.mxu0 %v3335_v34 }
 0x7c0   :  { %3169 = vmatpush3.bf16.msra.mxu0 %v3335_v34 }
 0x7c1   :  { %3170 = vmatprep.subr.bf16.mxu0 %v3336_v5 }
 0x7c4   :  { %3171 = vmatpush3.bf16.msra.mxu0 %v3336_v5 }
 0x7c5   :  { %3172 = vmatprep.subr.bf16.mxu0 %v3337_v52 }
 0x7c8   :  { %3173 = vmatpush3.bf16.msra.mxu0 %v3337_v52 }
 0x7c9   :  { %3174 = vmatprep.subr.bf16.mxu0 %v3338_v57 }
 0x7cc   :  { %3175 = vmatpush3.bf16.msra.mxu0 %v3338_v57 }
 0x7cd   :  { %3176 = vmatprep.subr.bf16.mxu0 %v3339_v51 }
 0x7d0   :  { %3177 = vmatpush3.bf16.msra.mxu0 %v3339_v51 }
 0x7d3   :  { %3179 = vmatmul.mubr.bf16.vlgmr.msra.gmra.mrb[32].mxu0 %v2486_v2 }
 0x7d4   :  { %3182 = vmatprep.mubr.bf16.mxu0 %v2487_v9 }
 0x886   :  { %v2408_v59 = vpop.f32.mrb[28].mxu0  ;;  %v2449_v56 = vpop.f32.mrb[52].mxu1 }
 0x887   :  { %v2455_v13 = vadd.f32 %v2408_v59, %v3789_v47  ;;  %v2410_v25 = vpop.f32.mrb[29].mxu0  ;;  %v3160_v37 = vpop.f32.mrb[53].mxu1  ;;  %v3420_v47 = vld [vmem:[%s4096_s4] ss:$0 sm:$0xff]  ;;  %s3550_s4 = smov [#allocation11]  }
 0x888   :  { %v2456_v60 = vadd.f32 %v2410_v25, %v3791_v49  ;;  %v2412_v62 = vpop.f32.mrb[30].mxu0  ;;  %v2452_v40 = vpop.f32.mrb[54].mxu1  ;;  %v2469_v61 = vadd.f32 %v3420_v47, %v2449_v56  ;;  %v2885_v49 = vld [vmem:[%s4098_s6] ss:$0 sm:$0xff]  ;;  %s2638_s6 = sshll.u32 %s3550_s4, 4  ;;  %s2639_s6 = int_to_ptr.vmem [resolvable:$true] %s2638_s6 }
 0x889   :  { %v2883_v33 = vmul.f32 -1.442695, %v2455_v13  ;;  %v2413_v22 = vpop.f32.mrb[31].mxu0  ;;  %v3161_v12 = vpop.f32.mrb[55].mxu1  ;;  %s3509_s9 = scalar_lea.vmem %s2639_s6, 1024  ;;  %p3514_p5 = scmp.lt.s32.totalorder %s2639_s6, %s2639_s6 }
 0x88a   :  { %v2884_v63 = vmul.f32 -1.442695, %v2456_v60  ;;  %p3510_p4 = scmp.ne.s32.totalorder %s2639_s6, %s3509_s9  ;;  %p3515_p6 = scmp.lt.s32.totalorder %s3509_s9, %s3509_s9 }
 0x88b   :  { %3410 = vpow2.f32 %v2883_v33 }
 0x88c   :  { %3412 = vpow2.f32 %v2884_v63  ;;  %p3516_p7 = por %p3515_p6, %p3514_p5 }
 0x88e   :  { %p3517_p8 = pnand %p3516_p7, %p3510_p4 }
 0x895   :  { %v3411_v6 = vpop.eup %3410 }
 0x896   :  { %v2463_v23 = vadd.f32 1.0, %v3411_v6  ;;  %v3413_v18 = vpop.eup %3412 }
 0x897   :  { %v2464_v55 = vadd.f32 1.0, %v3413_v18 }
 0x898   :  { %3414 = vrcp.f32 %v2463_v23 }
 0x8a2   :  { %v3415_v0 = vpop.eup %3414 }
 0x8a3   :  { %v2470_v17 = vmul.f32 %v3415_v0, %v2469_v61 }
 0x8a5   :  { %v2471_v50 = vadd.f32 %v2470_v17, %v3803_v53 }
 0x8a6   :  { %v3180_v58 = vpop.f32.mrb[32].mxu0 }
 0x8a7   :  { %3416 = vtanh.f32 %v2471_v50  ;;  %v2603_v15 = vadd.f32 %v3180_v58, %v2885_v49  ;;  %v2594_v19 = vpop.f32.mrb[33].mxu0 }
 0x8a8   :  { %v2595_v26 = vadd.f32 %v2885_v49, %v2594_v19  ;;  %v3181_v4 = vpop.f32.mrb[34].mxu0  ;;  %3418 = vrcp.f32 %v2464_v55 }
 0x8a9   :  { %2627 = vst [vmem:[#allocation11 + $0x10] sm:$0xff] %v2603_v15  ;;  %v2606_v8 = vadd.f32 %v3181_v4, %v2885_v49  ;;  %v2597_v10 = vpop.f32.mrb[35].mxu0 }
 0x8aa   :  { %2625 = vst [vmem:[#allocation11] sm:$0xff] %v2595_v26  ;;  %v2598_v14 = vadd.f32 %v2885_v49, %v2597_v10 }
 0x8ab   :  { %2628 = vst [vmem:[#allocation11 + $0x18] sm:$0xff] %v2606_v8 }
 0x8ac   :  { %2626 = vst [vmem:[#allocation11 + $0x8] sm:$0xff] %v2598_v14 }
 0x8b1   :  { %v3417_v16 = vpop.eup %3416 }
 0x8b2   :  { %v2473_v20 = vsub.f32 %v4059_v46, %v3417_v16  ;;  %v3419_v21 = vpop.eup %3418 }
 0x8b4   :  { %v2474_v53 = vmul.f32 %v3419_v21, %v2473_v20 }
 0x8b6   :  { %v2475_v24 = vadd.f32 %v3417_v16, %v2474_v53 }
 0x8b8   :  { %v2488_v27 = vpack.c.bf16 %v2475_v24, %v4059_v46 }
 0x8ba   :  { %3183 = vmatmul.mubr.bf16.gmra.mrb[36].mxu0 %v2488_v27 }
 0x98d   :  { %v3184_v11 = vpop.f32.mrb[36].mxu0 }
 0x98e   :  { %v2619_v28 = vadd.f32 %v3184_v11, %v2885_v49  ;;  %v2610_v30 = vpop.f32.mrb[37].mxu0 }
 0x98f   :  { %v2611_v3 = vadd.f32 %v2885_v49, %v2610_v30  ;;  %v3185_v31 = vpop.f32.mrb[38].mxu0 }
 0x990   :  { %2631 = vst [vmem:[#allocation11 + $0x30] sm:$0xff] %v2619_v28  ;;  %v2622_v35 = vadd.f32 %v3185_v31, %v2885_v49  ;;  %v2613_v32 = vpop.f32.mrb[39].mxu0 }
 0x991   :  { %2629 = vst [vmem:[#allocation11 + $0x20] sm:$0xff] %v2611_v3  ;;  %v2614_v54 = vadd.f32 %v2885_v49, %v2613_v32 }
 0x992   :  { %2632 = vst [vmem:[#allocation11 + $0x38] sm:$0xff] %v2622_v35 }
 0x993   :  { %2630 = vst [vmem:[#allocation11 + $0x28] sm:$0xff] %v2614_v54 }
 0x994   :  { %3520 = shalt.err (!%p3517_p8)
}
 0x995   :  { %s3521_s14 = scalar_lea.hbm %s4099_s7, 1024 }
 0x996   :  { %p3522_p9 = scmp.ne.s32.totalorder %s4099_s7, %s3521_s14  ;;  %p3525_p10 = scmp.lt.u32.totalorder %s3521_s14, %s4099_s7 }
 0x998   :  { %p3527_p11 = pnand %p3525_p10, %p3522_p9 }
 0x99a   :  { %3530 = shalt.err (!%p3527_p11)
}
 0x99b   :  { %s3551_s16 = smov 128   ;;  %s3552_s19 = smov 8  }
 0x99c   :  { %2644 = dma.vmem_to_hbm [thread:$0]  %s2639_s6, 1024, %s4099_s7, [#allocation5], %s3551_s16, %s3551_s16, %s3552_s19  }
 0x99d   :  { %3537 = dma.done.wait [#allocation5], 1024  }
 0x99e   :  { %3538 = vsyncadd [#allocation5], 4294966272 }
 0x99f   :  { %2648 = vsyncpa [#allocation4], 1 }
 0x9a0   :  { %2649 = vsyncpa [#allocation7], 1 }
 0x9a1   :  { %2650 = vsyncpa [#allocation10], 1 }
 0x9a2   :  { %2651 = vsyncpa [#allocation5], 1 }

</bundles_post_ra>
